<compile_context>
chip_gen: v5e
topology: v5e:2x2
jax: 0.10.0
libtpu: 0.0.40
codegen_flags: <defaults>
</compile_context>

<pallas_src>
import functools

import jax
import jax.numpy as jnp
from jax.experimental import pallas as pl
from jax.experimental.pallas import tpu as pltpu


# ----------------------------- in-kernel helpers -----------------------------
def _layernorm(x, scale, shift, eps=1e-5):
    # matches torch: mean / var(unbiased=False); rsqrt goes to the EUP slot.
    mean = jnp.mean(x, axis=-1, keepdims=True)
    var = jnp.mean(jnp.square(x - mean), axis=-1, keepdims=True)
    return (x - mean) * jax.lax.rsqrt(var + eps) * scale + shift


def _gelu_tanh(x):
    # matches the reference GELU (tanh approximation).
    return x * 0.5 * (1.0 + jnp.tanh(
        jnp.sqrt(2.0 / jnp.pi) * (x + 0.044715 * x * x * x)))


# ----------------------- fused transformer-stack kernel ----------------------
# grid = (n_layers,). The (B*T, D) residual stream is resident in the output
# block across all layer steps; per-layer weights stream via a squeezed
# leading-L BlockSpec (auto double-buffered by the pipeline).
def transformer_stack_kernel(x_ref, bias_ref, fln_s_ref, fln_b_ref,
                             ln1_s_ref, ln1_b_ref, wqkv_ref, wo_ref, bo_ref,
                             ln2_s_ref, ln2_b_ref, w1_ref, b1_ref, w2_ref,
                             b2_ref,
                             o_ref, *, num_heads, batch, seq):
    l = pl.program_id(0)
    n_layers = pl.num_programs(0)
    N, D = o_ref.shape                       # N = batch * seq
    hd = D // num_heads

    # Load the residual stream into the resident output block once.
    @pl.when(l == 0)
    def _():
        o_ref[...] = x_ref[...]

    x = o_ref[...]                           # (N, D) f32

    # ---------------- attention sublayer (pre-norm) ----------------
    xn = _layernorm(x, ln1_s_ref[...], ln1_b_ref[...])
    qkv = jnp.dot(xn.astype(wqkv_ref.dtype), wqkv_ref[...],
                  preferred_element_type=jnp.float32)        # (N, 3D) f32
    # 1/sqrt(hd) already folded into the Q weight columns at init.
    qkv16 = qkv.astype(jnp.bfloat16)         # single cast for the MXU inputs
    q = qkv16[:, 0 * D:1 * D]
    k = qkv16[:, 1 * D:2 * D]
    v = qkv16[:, 2 * D:3 * D]

    # Causal additive bias (resident input), hoisted broadcast over batch.
    bias3 = jnp.broadcast_to(bias_ref[...][None, :, :], (batch, seq, seq))

    ctx_parts = []
    for h in range(num_heads):               # static unroll over heads
        sl = slice(h * hd, (h + 1) * hd)
        qh = q[:, sl].reshape(batch, seq, hd)
        kh = k[:, sl].reshape(batch, seq, hd)
        vh = v[:, sl].reshape(batch, seq, hd)
        # bf16 MXU matmuls, f32 accumulation; softmax stays in f32.
        s = jnp.einsum('bqd,bkd->bqk', qh, kh,
                       preferred_element_type=jnp.float32) + bias3
        s = s - jnp.max(s, axis=-1, keepdims=True)
        p = jnp.exp(s)
        p = p * pl.reciprocal(jnp.sum(p, axis=-1, keepdims=True), approx=True)
        ctx_h = jnp.einsum('bqk,bkd->bqd', p.astype(jnp.bfloat16), vh,
                           preferred_element_type=jnp.float32)
        ctx_parts.append(ctx_h.reshape(N, hd))
    ctx = jnp.concatenate(ctx_parts, axis=-1)                # (N, D) f32

    attn = jnp.dot(ctx.astype(wo_ref.dtype), wo_ref[...],
                   preferred_element_type=jnp.float32) + bo_ref[...]
    x = x + attn                             # residual (dropout rate = 0.0)

    # ---------------- feedforward sublayer (pre-norm) ----------------
    xn2 = _layernorm(x, ln2_s_ref[...], ln2_b_ref[...])
    h1 = jnp.dot(xn2.astype(w1_ref.dtype), w1_ref[...],
                 preferred_element_type=jnp.float32) + b1_ref[...]
    h1 = _gelu_tanh(h1)
    ff = jnp.dot(h1.astype(w2_ref.dtype), w2_ref[...],
                 preferred_element_type=jnp.float32) + b2_ref[...]
    x = x + ff                               # residual (dropout rate = 0.0)

    # Carry to next layer; on the last layer, fuse the final LayerNorm so the
    # vocab head kernel is a pure matmul (LN not recomputed per vocab tile).
    @pl.when(l < n_layers - 1)
    def _():
        o_ref[...] = x

    @pl.when(l == n_layers - 1)
    def _():
        o_ref[...] = _layernorm(x, fln_s_ref[...], fln_b_ref[...])


# ---------------------- vocab-tiled output-head kernel -----------------------
def final_head_kernel(x_ref, wout_ref, o_ref):
    o_ref[...] = jnp.dot(x_ref[...].astype(wout_ref.dtype), wout_ref[...],
                         preferred_element_type=jnp.float32
                         ).astype(o_ref.dtype)


# --------------------------------- wrappers ----------------------------------
def run_transformer_stack(x2d, bias, fln_s, fln_b, blocks, *,
                          num_heads, batch, seq):
    """x2d: (batch*seq, D) f32; blocks: dict of L-stacked per-layer params."""
    L, D, _ = blocks['wqkv'].shape
    N = batch * seq
    names = ['ln1_s', 'ln1_b', 'wqkv', 'wo', 'bo',
             'ln2_s', 'ln2_b', 'w1', 'b1', 'w2', 'b2']
    w_args = [blocks[n] for n in names]

    def wspec(name):
        shp = (None,) + blocks[name].shape[1:]      # squeeze the leading L dim
        if name in ('wqkv', 'w1', 'w2') and L >= 3:
            # extra pipelining depth on the big weight streams once there are
            # enough layer steps for it to matter.
            return pl.BlockSpec(shp, lambda l: (l, 0, 0),
                                pipeline_mode=pl.Buffered(3))
        return pl.BlockSpec(shp, lambda l: (l, 0, 0))

    resident2d = lambda l: (0, 0)
    # TODO(synk): when scaling D, tile the (D,3D)/(D,4D)/(4D,D) weight matmuls
    # over K/N and set pltpu.CompilerParams(vmem_limit_bytes=...) — the toy
    # config fits the default scoped VMEM on all of v5e/v6e/v7x.
    return pl.pallas_call(
        functools.partial(transformer_stack_kernel, num_heads=num_heads,
                          batch=batch, seq=seq),
        out_shape=jax.ShapeDtypeStruct((N, D), jnp.float32),
        grid=(L,),
        in_specs=[pl.BlockSpec((N, D), resident2d),        # residual stream
                  pl.BlockSpec((seq, seq), resident2d),    # causal bias
                  pl.BlockSpec((1, D), resident2d),        # final LN scale
                  pl.BlockSpec((1, D), resident2d)]        # final LN shift
                 + [wspec(n) for n in names],
        out_specs=pl.BlockSpec((N, D), resident2d),
        compiler_params=pltpu.CompilerParams(
            dimension_semantics=("arbitrary",)),
    )(x2d, bias, fln_s, fln_b, *w_args)


def run_final_head(x2d, w_out):
    N, D = x2d.shape
    V = w_out.shape[1]
    tile_v = next(t for t in (2048, 1024, 512, 256, 128) if V % t == 0)
    n_tiles = V // tile_v
    if n_tiles >= 3:
        w_spec = pl.BlockSpec((D, tile_v), lambda j: (0, j),
                              pipeline_mode=pl.Buffered(3))
    else:
        w_spec = pl.BlockSpec((D, tile_v), lambda j: (0, j))
    return pl.pallas_call(
        final_head_kernel,
        out_shape=jax.ShapeDtypeStruct((N, V), jnp.float32),
        grid=(n_tiles,),
        in_specs=[pl.BlockSpec((N, D), lambda j: (0, 0)),   # resident acts
                  w_spec],
        out_specs=pl.BlockSpec((N, tile_v), lambda j: (0, j)),
        compiler_params=pltpu.CompilerParams(
            dimension_semantics=("parallel",)),
    )(x2d, w_out)


# ----------------------------- parameter creation ----------------------------
def init_params(key, cfg):
    D = cfg['emb_dim']
    V = cfg['vocab_size']
    C = cfg['context_length']
    L = cfg['n_layers']
    hd = D // cfg['n_heads']
    keys = jax.random.split(key, 7)
    ki = iter(keys)

    def nrm(k, shape, std=0.02):
        return jax.random.normal(k, shape, jnp.float32) * std

    # Fold 1/sqrt(head_dim) into the Q columns of the fused QKV weight.
    wqkv = nrm(next(ki), (L, D, 3 * D))
    wqkv = wqkv.at[:, :, :D].multiply(float(hd) ** -0.5)

    params = {
        'tok_emb': nrm(next(ki), (V, D)),
        'pos_emb': nrm(next(ki), (C, D)),
        'w_out': nrm(next(ki), (D, V)).astype(jnp.bfloat16),
        'final_ln_s': jnp.ones((1, D), jnp.float32),
        'final_ln_b': jnp.zeros((1, D), jnp.float32),
        # per-layer params stacked along a leading L dim; fused q|k|v weight.
        'blocks': {
            'ln1_s': jnp.ones((L, 1, D), jnp.float32),
            'ln1_b': jnp.zeros((L, 1, D), jnp.float32),
            'wqkv': wqkv.astype(jnp.bfloat16),
            'wo':   nrm(next(ki), (L, D, D)).astype(jnp.bfloat16),
            'bo':   jnp.zeros((L, 1, D), jnp.float32),
            'ln2_s': jnp.ones((L, 1, D), jnp.float32),
            'ln2_b': jnp.zeros((L, 1, D), jnp.float32),
            'w1':   nrm(next(ki), (L, D, 4 * D)).astype(jnp.bfloat16),
            'b1':   jnp.zeros((L, 1, 4 * D), jnp.float32),
            'w2':   nrm(next(ki), (L, 4 * D, D)).astype(jnp.bfloat16),
            'b2':   jnp.zeros((L, 1, D), jnp.float32),
        },
    }
    return params


# --------------------------------- full model --------------------------------
def _causal_bias(T):
    i = jnp.arange(T, dtype=jnp.int32)[:, None]
    j = jnp.arange(T, dtype=jnp.int32)[None, :]
    return jnp.where(j <= i, 0.0, -1e30).astype(jnp.float32)


def chat_model_forward(in_idx, params, cfg):
    B, T = in_idx.shape
    D = cfg['emb_dim']
    V = cfg['vocab_size']
    # TODO(synk): token/position embedding gather stays in the JAX wrapper
    # (data-dependent row gather; not worth a manual DMA gather at this scale).
    tok = jnp.take(params['tok_emb'], in_idx, axis=0)      # (B, T, D)
    pos = params['pos_emb'][:T][None, :, :]                # (1, T, D)
    x = (tok + pos).reshape(B * T, D)   # drop_rate = 0.0 -> dropout is identity
    bias = _causal_bias(T)
    x = run_transformer_stack(x, bias,
                              params['final_ln_s'], params['final_ln_b'],
                              params['blocks'],
                              num_heads=cfg['n_heads'], batch=B, seq=T)
    logits = run_final_head(x, params['w_out'])
    return logits.reshape(B, T, V)


# ------------------------------------ main ------------------------------------
if __name__ == "__main__":
    cfg = {
        'vocab_size': 256,
        'context_length': 16,
        'emb_dim': 128,      # lane-dense embedding dim (multiple of 128)
        'n_heads': 4,        # head_dim = 32
        'n_layers': 2,
        'drop_rate': 0.0,    # dropout is identity at rate 0 (eval semantics)
        'qkv_bias': False,
    }
    key = jax.random.PRNGKey(0)
    pkey, dkey = jax.random.split(key)
    params = init_params(pkey, cfg)

    B, T = 2, 8
    in_idx = jax.random.randint(dkey, (B, T), 0, cfg['vocab_size'],
                                dtype=jnp.int32)

    logits = chat_model_forward(in_idx, params, cfg)
    logits = jax.block_until_ready(logits)
    assert logits.shape == (B, T, cfg['vocab_size'])
    assert bool(jnp.all(jnp.isfinite(logits)))
    print("KERNEL_OK")
</pallas_src>

<mosaic_0001>
module attributes {stable_mosaic.version = 11 : i64} {
  func.func @transformer_stack_kernel(%arg0: i32, %arg1: memref<16x128xf32, #tpu.memory_space<vmem>>, %arg2: memref<8x8xf32, #tpu.memory_space<vmem>>, %arg3: memref<1x128xf32, #tpu.memory_space<vmem>>, %arg4: memref<1x128xf32, #tpu.memory_space<vmem>>, %arg5: memref<1x1x128xf32, #tpu.memory_space<vmem>>, %arg6: memref<1x1x128xf32, #tpu.memory_space<vmem>>, %arg7: memref<1x128x384xbf16, #tpu.memory_space<vmem>>, %arg8: memref<1x128x128xbf16, #tpu.memory_space<vmem>>, %arg9: memref<1x1x128xf32, #tpu.memory_space<vmem>>, %arg10: memref<1x1x128xf32, #tpu.memory_space<vmem>>, %arg11: memref<1x1x128xf32, #tpu.memory_space<vmem>>, %arg12: memref<1x128x512xbf16, #tpu.memory_space<vmem>>, %arg13: memref<1x1x512xf32, #tpu.memory_space<vmem>>, %arg14: memref<1x512x128xbf16, #tpu.memory_space<vmem>>, %arg15: memref<1x1x128xf32, #tpu.memory_space<vmem>>, %arg16: memref<16x128xf32, #tpu.memory_space<vmem>>) attributes {dimension_semantics = [#tpu.dimension_semantics<arbitrary>], iteration_bounds = array<i64: 2>, scalar_prefetch = 0 : i64, scratch_operands = 0 : i64, tpu.core_type = #tpu.core_type<tc>, window_params = [{pipeline_mode = #tpu.pipeline_mode<synchronous>, transform_indices = @transform_0, window_bounds = array<i64: 16, 128>}, {pipeline_mode = #tpu.pipeline_mode<synchronous>, transform_indices = @transform_1, window_bounds = array<i64: 8, 8>}, {pipeline_mode = #tpu.pipeline_mode<synchronous>, transform_indices = @transform_2, window_bounds = array<i64: 1, 128>}, {pipeline_mode = #tpu.pipeline_mode<synchronous>, transform_indices = @transform_3, window_bounds = array<i64: 1, 128>}, {transform_indices = @transform_4, window_bounds = array<i64: 1, 1, 128>}, {transform_indices = @transform_5, window_bounds = array<i64: 1, 1, 128>}, {transform_indices = @transform_6, window_bounds = array<i64: 1, 128, 384>}, {transform_indices = @transform_7, window_bounds = array<i64: 1, 128, 128>}, {transform_indices = @transform_8, window_bounds = array<i64: 1, 1, 128>}, {transform_indices = @transform_9, window_bounds = array<i64: 1, 1, 128>}, {transform_indices = @transform_10, window_bounds = array<i64: 1, 1, 128>}, {transform_indices = @transform_11, window_bounds = array<i64: 1, 128, 512>}, {transform_indices = @transform_12, window_bounds = array<i64: 1, 1, 512>}, {transform_indices = @transform_13, window_bounds = array<i64: 1, 512, 128>}, {transform_indices = @transform_14, window_bounds = array<i64: 1, 1, 128>}, {pipeline_mode = #tpu.pipeline_mode<synchronous>, transform_indices = @transform_15, window_bounds = array<i64: 16, 128>}]} {
    %c0_i32 = arith.constant 0 : i32
    %0 = arith.cmpi eq, %arg0, %c0_i32 : i32
    %1 = arith.extui %0 : i1 to i32
    %c0_i32_0 = arith.constant 0 : i32
    %2 = arith.cmpi ne, %1, %c0_i32_0 : i32
    scf.if %2 {
      %c0_73 = arith.constant 0 : index
      %c0_74 = arith.constant 0 : index
      %199 = vector.load %arg1[%c0_73, %c0_74] : memref<16x128xf32, #tpu.memory_space<vmem>>, vector<16x128xf32>
      %c0_75 = arith.constant 0 : index
      %c0_76 = arith.constant 0 : index
      %200 = vector.load %arg16[%c0_75, %c0_76] : memref<16x128xf32, #tpu.memory_space<vmem>>, vector<16x128xf32>
      tpu.vector_store %arg16[%c0_75, %c0_76], %199 {strides = array<i32>} : memref<16x128xf32, #tpu.memory_space<vmem>>, vector<16x128xf32>,
    } else {
    }
    %c0 = arith.constant 0 : index
    %c0_1 = arith.constant 0 : index
    %3 = vector.load %arg16[%c0, %c0_1] : memref<16x128xf32, #tpu.memory_space<vmem>>, vector<16x128xf32>
    %c0_2 = arith.constant 0 : index
    %c0_3 = arith.constant 0 : index
    %c0_4 = arith.constant 0 : index
    %4 = vector.load %arg5[%c0_2, %c0_3, %c0_4] : memref<1x1x128xf32, #tpu.memory_space<vmem>>, vector<1x1x128xf32>
    %5 = vector.shape_cast %4 : vector<1x1x128xf32> to vector<1x128xf32>
    %c0_5 = arith.constant 0 : index
    %c0_6 = arith.constant 0 : index
    %c0_7 = arith.constant 0 : index
    %6 = vector.load %arg6[%c0_5, %c0_6, %c0_7] : memref<1x1x128xf32, #tpu.memory_space<vmem>>, vector<1x1x128xf32>
    %7 = vector.shape_cast %6 : vector<1x1x128xf32> to vector<1x128xf32>
    %cst = arith.constant dense<0.000000e+00> : vector<16xf32>
    %8 = vector.multi_reduction <add>, %3, %cst [1] : vector<16x128xf32> to vector<16xf32>
    %9 = vector.shape_cast %8 : vector<16xf32> to vector<16x1xf32>
    %cst_8 = arith.constant 1.280000e+02 : f32
    %10 = vector.broadcast %cst_8 : f32 to vector<16x1xf32>
    %11 = arith.divf %9, %10 : vector<16x1xf32>
    %12 = vector.broadcast %11 : vector<16x1xf32> to vector<16x128xf32>
    %13 = arith.subf %3, %12 : vector<16x128xf32>
    %14 = arith.mulf %13, %13 : vector<16x128xf32>
    %cst_9 = arith.constant dense<0.000000e+00> : vector<16xf32>
    %15 = vector.multi_reduction <add>, %14, %cst_9 [1] : vector<16x128xf32> to vector<16xf32>
    %16 = vector.shape_cast %15 : vector<16xf32> to vector<16x1xf32>
    %cst_10 = arith.constant 1.280000e+02 : f32
    %17 = vector.broadcast %cst_10 : f32 to vector<16x1xf32>
    %18 = arith.divf %16, %17 : vector<16x1xf32>
    %19 = vector.broadcast %11 : vector<16x1xf32> to vector<16x128xf32>
    %20 = arith.subf %3, %19 : vector<16x128xf32>
    %cst_11 = arith.constant 9.99999974E-6 : f32
    %21 = vector.broadcast %cst_11 : f32 to vector<16x1xf32>
    %22 = arith.addf %18, %21 : vector<16x1xf32>
    %23 = math.rsqrt %22 : vector<16x1xf32>
    %24 = vector.broadcast %23 : vector<16x1xf32> to vector<16x128xf32>
    %25 = arith.mulf %20, %24 : vector<16x128xf32>
    %26 = vector.broadcast %5 : vector<1x128xf32> to vector<16x128xf32>
    %27 = arith.mulf %25, %26 : vector<16x128xf32>
    %28 = vector.broadcast %7 : vector<1x128xf32> to vector<16x128xf32>
    %29 = arith.addf %27, %28 : vector<16x128xf32>
    %30 = arith.truncf %29 : vector<16x128xf32> to vector<16x128xbf16>
    %c0_12 = arith.constant 0 : index
    %c0_13 = arith.constant 0 : index
    %c0_14 = arith.constant 0 : index
    %31 = vector.load %arg7[%c0_12, %c0_13, %c0_14] : memref<1x128x384xbf16, #tpu.memory_space<vmem>>, vector<1x128x384xbf16>
    %32 = vector.shape_cast %31 : vector<1x128x384xbf16> to vector<128x384xbf16>
    %cst_15 = arith.constant dense<0.000000e+00> : vector<16x384xf32>
    %33 = tpu.matmul %30, %32, %cst_15 {dimension_numbers = #tpu.dot_dimension_numbers<[1], [0], [0], [1], [0, 0, 1, 1], [], []>} : vector<16x128xbf16>, vector<128x384xbf16>, vector<16x384xf32> -> vector<16x384xf32>
    %34 = arith.truncf %33 : vector<16x384xf32> to vector<16x384xbf16>
    %35 = vector.extract_strided_slice %34 {offsets = [0, 0], sizes = [16, 128], strides = [1, 1]} : vector<16x384xbf16> to vector<16x128xbf16>
    %36 = vector.extract_strided_slice %34 {offsets = [0, 128], sizes = [16, 128], strides = [1, 1]} : vector<16x384xbf16> to vector<16x128xbf16>
    %37 = vector.extract_strided_slice %34 {offsets = [0, 256], sizes = [16, 128], strides = [1, 1]} : vector<16x384xbf16> to vector<16x128xbf16>
    %c0_16 = arith.constant 0 : index
    %c0_17 = arith.constant 0 : index
    %38 = vector.load %arg2[%c0_16, %c0_17] : memref<8x8xf32, #tpu.memory_space<vmem>>, vector<8x8xf32>
    %39 = vector.shape_cast %38 : vector<8x8xf32> to vector<1x8x8xf32>
    %40 = vector.shape_cast %39 : vector<1x8x8xf32> to vector<1x8x8xf32>
    %41 = vector.broadcast %40 : vector<1x8x8xf32> to vector<2x8x8xf32>
    %42 = vector.extract_strided_slice %35 {offsets = [0, 0], sizes = [16, 32], strides = [1, 1]} : vector<16x128xbf16> to vector<16x32xbf16>
    %43 = vector.shape_cast %42 : vector<16x32xbf16> to vector<2x8x32xbf16>
    %44 = vector.extract_strided_slice %36 {offsets = [0, 0], sizes = [16, 32], strides = [1, 1]} : vector<16x128xbf16> to vector<16x32xbf16>
    %45 = vector.shape_cast %44 : vector<16x32xbf16> to vector<2x8x32xbf16>
    %46 = vector.extract_strided_slice %37 {offsets = [0, 0], sizes = [16, 32], strides = [1, 1]} : vector<16x128xbf16> to vector<16x32xbf16>
    %47 = vector.shape_cast %46 : vector<16x32xbf16> to vector<2x8x32xbf16>
    "tpu.trace_start"() <{level = 10 : i32, message = "bqd,bkd->bqk"}> : () -> ()
    %cst_18 = arith.constant dense<0.000000e+00> : vector<2x8x8xf32>
    %48 = tpu.matmul %43, %45, %cst_18 {dimension_numbers = #tpu.dot_dimension_numbers<[2], [2], [1], [1], [0, 0, 0, 1, 1, 1], [0], [0]>} : vector<2x8x32xbf16>, vector<2x8x32xbf16>, vector<2x8x8xf32> -> vector<2x8x8xf32>
    "tpu.trace_stop"() : () -> ()
    %49 = arith.addf %48, %41 : vector<2x8x8xf32>
    %cst_19 = arith.constant dense<0xFF800000> : vector<2x8xf32>
    %50 = vector.multi_reduction <maximumf>, %49, %cst_19 [2] : vector<2x8x8xf32> to vector<2x8xf32>
    %51 = vector.shape_cast %50 : vector<2x8xf32> to vector<2x8x1xf32>
    %52 = vector.broadcast %51 : vector<2x8x1xf32> to vector<2x8x8xf32>
    %53 = arith.subf %49, %52 : vector<2x8x8xf32>
    %54 = math.exp %53 : vector<2x8x8xf32>
    %cst_20 = arith.constant dense<0.000000e+00> : vector<2x8xf32>
    %55 = vector.multi_reduction <add>, %54, %cst_20 [2] : vector<2x8x8xf32> to vector<2x8xf32>
    %56 = vector.shape_cast %55 : vector<2x8xf32> to vector<2x8x1xf32>
    %57 = tpu.reciprocal %56 {approx = true} : vector<2x8x1xf32> -> vector<2x8x1xf32>
    %58 = vector.broadcast %57 : vector<2x8x1xf32> to vector<2x8x8xf32>
    %59 = arith.mulf %54, %58 : vector<2x8x8xf32>
    %60 = arith.truncf %59 : vector<2x8x8xf32> to vector<2x8x8xbf16>
    "tpu.trace_start"() <{level = 10 : i32, message = "bqk,bkd->bqd"}> : () -> ()
    %cst_21 = arith.constant dense<0.000000e+00> : vector<2x8x32xf32>
    %61 = tpu.matmul %60, %47, %cst_21 {dimension_numbers = #tpu.dot_dimension_numbers<[2], [1], [1], [2], [0, 0, 0, 1, 1, 2], [0], [0]>} : vector<2x8x8xbf16>, vector<2x8x32xbf16>, vector<2x8x32xf32> -> vector<2x8x32xf32>
    "tpu.trace_stop"() : () -> ()
    %62 = vector.shape_cast %61 : vector<2x8x32xf32> to vector<16x32xf32>
    %63 = vector.extract_strided_slice %35 {offsets = [0, 32], sizes = [16, 32], strides = [1, 1]} : vector<16x128xbf16> to vector<16x32xbf16>
    %64 = vector.shape_cast %63 : vector<16x32xbf16> to vector<2x8x32xbf16>
    %65 = vector.extract_strided_slice %36 {offsets = [0, 32], sizes = [16, 32], strides = [1, 1]} : vector<16x128xbf16> to vector<16x32xbf16>
    %66 = vector.shape_cast %65 : vector<16x32xbf16> to vector<2x8x32xbf16>
    %67 = vector.extract_strided_slice %37 {offsets = [0, 32], sizes = [16, 32], strides = [1, 1]} : vector<16x128xbf16> to vector<16x32xbf16>
    %68 = vector.shape_cast %67 : vector<16x32xbf16> to vector<2x8x32xbf16>
    "tpu.trace_start"() <{level = 10 : i32, message = "bqd,bkd->bqk"}> : () -> ()
    %cst_22 = arith.constant dense<0.000000e+00> : vector<2x8x8xf32>
    %69 = tpu.matmul %64, %66, %cst_22 {dimension_numbers = #tpu.dot_dimension_numbers<[2], [2], [1], [1], [0, 0, 0, 1, 1, 1], [0], [0]>} : vector<2x8x32xbf16>, vector<2x8x32xbf16>, vector<2x8x8xf32> -> vector<2x8x8xf32>
    "tpu.trace_stop"() : () -> ()
    %70 = arith.addf %69, %41 : vector<2x8x8xf32>
    %cst_23 = arith.constant dense<0xFF800000> : vector<2x8xf32>
    %71 = vector.multi_reduction <maximumf>, %70, %cst_23 [2] : vector<2x8x8xf32> to vector<2x8xf32>
    %72 = vector.shape_cast %71 : vector<2x8xf32> to vector<2x8x1xf32>
    %73 = vector.broadcast %72 : vector<2x8x1xf32> to vector<2x8x8xf32>
    %74 = arith.subf %70, %73 : vector<2x8x8xf32>
    %75 = math.exp %74 : vector<2x8x8xf32>
    %cst_24 = arith.constant dense<0.000000e+00> : vector<2x8xf32>
    %76 = vector.multi_reduction <add>, %75, %cst_24 [2] : vector<2x8x8xf32> to vector<2x8xf32>
    %77 = vector.shape_cast %76 : vector<2x8xf32> to vector<2x8x1xf32>
    %78 = tpu.reciprocal %77 {approx = true} : vector<2x8x1xf32> -> vector<2x8x1xf32>
    %79 = vector.broadcast %78 : vector<2x8x1xf32> to vector<2x8x8xf32>
    %80 = arith.mulf %75, %79 : vector<2x8x8xf32>
    %81 = arith.truncf %80 : vector<2x8x8xf32> to vector<2x8x8xbf16>
    "tpu.trace_start"() <{level = 10 : i32, message = "bqk,bkd->bqd"}> : () -> ()
    %cst_25 = arith.constant dense<0.000000e+00> : vector<2x8x32xf32>
    %82 = tpu.matmul %81, %68, %cst_25 {dimension_numbers = #tpu.dot_dimension_numbers<[2], [1], [1], [2], [0, 0, 0, 1, 1, 2], [0], [0]>} : vector<2x8x8xbf16>, vector<2x8x32xbf16>, vector<2x8x32xf32> -> vector<2x8x32xf32>
    "tpu.trace_stop"() : () -> ()
    %83 = vector.shape_cast %82 : vector<2x8x32xf32> to vector<16x32xf32>
    %84 = vector.extract_strided_slice %35 {offsets = [0, 64], sizes = [16, 32], strides = [1, 1]} : vector<16x128xbf16> to vector<16x32xbf16>
    %85 = vector.shape_cast %84 : vector<16x32xbf16> to vector<2x8x32xbf16>
    %86 = vector.extract_strided_slice %36 {offsets = [0, 64], sizes = [16, 32], strides = [1, 1]} : vector<16x128xbf16> to vector<16x32xbf16>
    %87 = vector.shape_cast %86 : vector<16x32xbf16> to vector<2x8x32xbf16>
    %88 = vector.extract_strided_slice %37 {offsets = [0, 64], sizes = [16, 32], strides = [1, 1]} : vector<16x128xbf16> to vector<16x32xbf16>
    %89 = vector.shape_cast %88 : vector<16x32xbf16> to vector<2x8x32xbf16>
    "tpu.trace_start"() <{level = 10 : i32, message = "bqd,bkd->bqk"}> : () -> ()
    %cst_26 = arith.constant dense<0.000000e+00> : vector<2x8x8xf32>
    %90 = tpu.matmul %85, %87, %cst_26 {dimension_numbers = #tpu.dot_dimension_numbers<[2], [2], [1], [1], [0, 0, 0, 1, 1, 1], [0], [0]>} : vector<2x8x32xbf16>, vector<2x8x32xbf16>, vector<2x8x8xf32> -> vector<2x8x8xf32>
    "tpu.trace_stop"() : () -> ()
    %91 = arith.addf %90, %41 : vector<2x8x8xf32>
    %cst_27 = arith.constant dense<0xFF800000> : vector<2x8xf32>
    %92 = vector.multi_reduction <maximumf>, %91, %cst_27 [2] : vector<2x8x8xf32> to vector<2x8xf32>
    %93 = vector.shape_cast %92 : vector<2x8xf32> to vector<2x8x1xf32>
    %94 = vector.broadcast %93 : vector<2x8x1xf32> to vector<2x8x8xf32>
    %95 = arith.subf %91, %94 : vector<2x8x8xf32>
    %96 = math.exp %95 : vector<2x8x8xf32>
    %cst_28 = arith.constant dense<0.000000e+00> : vector<2x8xf32>
    %97 = vector.multi_reduction <add>, %96, %cst_28 [2] : vector<2x8x8xf32> to vector<2x8xf32>
    %98 = vector.shape_cast %97 : vector<2x8xf32> to vector<2x8x1xf32>
    %99 = tpu.reciprocal %98 {approx = true} : vector<2x8x1xf32> -> vector<2x8x1xf32>
    %100 = vector.broadcast %99 : vector<2x8x1xf32> to vector<2x8x8xf32>
    %101 = arith.mulf %96, %100 : vector<2x8x8xf32>
    %102 = arith.truncf %101 : vector<2x8x8xf32> to vector<2x8x8xbf16>
    "tpu.trace_start"() <{level = 10 : i32, message = "bqk,bkd->bqd"}> : () -> ()
    %cst_29 = arith.constant dense<0.000000e+00> : vector<2x8x32xf32>
    %103 = tpu.matmul %102, %89, %cst_29 {dimension_numbers = #tpu.dot_dimension_numbers<[2], [1], [1], [2], [0, 0, 0, 1, 1, 2], [0], [0]>} : vector<2x8x8xbf16>, vector<2x8x32xbf16>, vector<2x8x32xf32> -> vector<2x8x32xf32>
    "tpu.trace_stop"() : () -> ()
    %104 = vector.shape_cast %103 : vector<2x8x32xf32> to vector<16x32xf32>
    %105 = vector.extract_strided_slice %35 {offsets = [0, 96], sizes = [16, 32], strides = [1, 1]} : vector<16x128xbf16> to vector<16x32xbf16>
    %106 = vector.shape_cast %105 : vector<16x32xbf16> to vector<2x8x32xbf16>
    %107 = vector.extract_strided_slice %36 {offsets = [0, 96], sizes = [16, 32], strides = [1, 1]} : vector<16x128xbf16> to vector<16x32xbf16>
    %108 = vector.shape_cast %107 : vector<16x32xbf16> to vector<2x8x32xbf16>
    %109 = vector.extract_strided_slice %37 {offsets = [0, 96], sizes = [16, 32], strides = [1, 1]} : vector<16x128xbf16> to vector<16x32xbf16>
    %110 = vector.shape_cast %109 : vector<16x32xbf16> to vector<2x8x32xbf16>
    "tpu.trace_start"() <{level = 10 : i32, message = "bqd,bkd->bqk"}> : () -> ()
    %cst_30 = arith.constant dense<0.000000e+00> : vector<2x8x8xf32>
    %111 = tpu.matmul %106, %108, %cst_30 {dimension_numbers = #tpu.dot_dimension_numbers<[2], [2], [1], [1], [0, 0, 0, 1, 1, 1], [0], [0]>} : vector<2x8x32xbf16>, vector<2x8x32xbf16>, vector<2x8x8xf32> -> vector<2x8x8xf32>
    "tpu.trace_stop"() : () -> ()
    %112 = arith.addf %111, %41 : vector<2x8x8xf32>
    %cst_31 = arith.constant dense<0xFF800000> : vector<2x8xf32>
    %113 = vector.multi_reduction <maximumf>, %112, %cst_31 [2] : vector<2x8x8xf32> to vector<2x8xf32>
    %114 = vector.shape_cast %113 : vector<2x8xf32> to vector<2x8x1xf32>
    %115 = vector.broadcast %114 : vector<2x8x1xf32> to vector<2x8x8xf32>
    %116 = arith.subf %112, %115 : vector<2x8x8xf32>
    %117 = math.exp %116 : vector<2x8x8xf32>
    %cst_32 = arith.constant dense<0.000000e+00> : vector<2x8xf32>
    %118 = vector.multi_reduction <add>, %117, %cst_32 [2] : vector<2x8x8xf32> to vector<2x8xf32>
    %119 = vector.shape_cast %118 : vector<2x8xf32> to vector<2x8x1xf32>
    %120 = tpu.reciprocal %119 {approx = true} : vector<2x8x1xf32> -> vector<2x8x1xf32>
    %121 = vector.broadcast %120 : vector<2x8x1xf32> to vector<2x8x8xf32>
    %122 = arith.mulf %117, %121 : vector<2x8x8xf32>
    %123 = arith.truncf %122 : vector<2x8x8xf32> to vector<2x8x8xbf16>
    "tpu.trace_start"() <{level = 10 : i32, message = "bqk,bkd->bqd"}> : () -> ()
    %cst_33 = arith.constant dense<0.000000e+00> : vector<2x8x32xf32>
    %124 = tpu.matmul %123, %110, %cst_33 {dimension_numbers = #tpu.dot_dimension_numbers<[2], [1], [1], [2], [0, 0, 0, 1, 1, 2], [0], [0]>} : vector<2x8x8xbf16>, vector<2x8x32xbf16>, vector<2x8x32xf32> -> vector<2x8x32xf32>
    "tpu.trace_stop"() : () -> ()
    %125 = vector.shape_cast %124 : vector<2x8x32xf32> to vector<16x32xf32>
    %126 = tpu.concatenate %62, %83, %104, %125 in 1 : vector<16x32xf32>, vector<16x32xf32>, vector<16x32xf32>, vector<16x32xf32> -> vector<16x128xf32>
    %127 = arith.truncf %126 : vector<16x128xf32> to vector<16x128xbf16>
    %c0_34 = arith.constant 0 : index
    %c0_35 = arith.constant 0 : index
    %c0_36 = arith.constant 0 : index
    %128 = vector.load %arg8[%c0_34, %c0_35, %c0_36] : memref<1x128x128xbf16, #tpu.memory_space<vmem>>, vector<1x128x128xbf16>
    %129 = vector.shape_cast %128 : vector<1x128x128xbf16> to vector<128x128xbf16>
    %cst_37 = arith.constant dense<0.000000e+00> : vector<16x128xf32>
    %130 = tpu.matmul %127, %129, %cst_37 {dimension_numbers = #tpu.dot_dimension_numbers<[1], [0], [0], [1], [0, 0, 1, 1], [], []>} : vector<16x128xbf16>, vector<128x128xbf16>, vector<16x128xf32> -> vector<16x128xf32>
    %c0_38 = arith.constant 0 : index
    %c0_39 = arith.constant 0 : index
    %c0_40 = arith.constant 0 : index
    %131 = vector.load %arg9[%c0_38, %c0_39, %c0_40] : memref<1x1x128xf32, #tpu.memory_space<vmem>>, vector<1x1x128xf32>
    %132 = vector.shape_cast %131 : vector<1x1x128xf32> to vector<1x128xf32>
    %133 = vector.broadcast %132 : vector<1x128xf32> to vector<16x128xf32>
    %134 = arith.addf %130, %133 : vector<16x128xf32>
    %135 = arith.addf %3, %134 : vector<16x128xf32>
    %c0_41 = arith.constant 0 : index
    %c0_42 = arith.constant 0 : index
    %c0_43 = arith.constant 0 : index
    %136 = vector.load %arg10[%c0_41, %c0_42, %c0_43] : memref<1x1x128xf32, #tpu.memory_space<vmem>>, vector<1x1x128xf32>
    %137 = vector.shape_cast %136 : vector<1x1x128xf32> to vector<1x128xf32>
    %c0_44 = arith.constant 0 : index
    %c0_45 = arith.constant 0 : index
    %c0_46 = arith.constant 0 : index
    %138 = vector.load %arg11[%c0_44, %c0_45, %c0_46] : memref<1x1x128xf32, #tpu.memory_space<vmem>>, vector<1x1x128xf32>
    %139 = vector.shape_cast %138 : vector<1x1x128xf32> to vector<1x128xf32>
    %cst_47 = arith.constant dense<0.000000e+00> : vector<16xf32>
    %140 = vector.multi_reduction <add>, %135, %cst_47 [1] : vector<16x128xf32> to vector<16xf32>
    %141 = vector.shape_cast %140 : vector<16xf32> to vector<16x1xf32>
    %cst_48 = arith.constant 1.280000e+02 : f32
    %142 = vector.broadcast %cst_48 : f32 to vector<16x1xf32>
    %143 = arith.divf %141, %142 : vector<16x1xf32>
    %144 = vector.broadcast %143 : vector<16x1xf32> to vector<16x128xf32>
    %145 = arith.subf %135, %144 : vector<16x128xf32>
    %146 = arith.mulf %145, %145 : vector<16x128xf32>
    %cst_49 = arith.constant dense<0.000000e+00> : vector<16xf32>
    %147 = vector.multi_reduction <add>, %146, %cst_49 [1] : vector<16x128xf32> to vector<16xf32>
    %148 = vector.shape_cast %147 : vector<16xf32> to vector<16x1xf32>
    %cst_50 = arith.constant 1.280000e+02 : f32
    %149 = vector.broadcast %cst_50 : f32 to vector<16x1xf32>
    %150 = arith.divf %148, %149 : vector<16x1xf32>
    %151 = vector.broadcast %143 : vector<16x1xf32> to vector<16x128xf32>
    %152 = arith.subf %135, %151 : vector<16x128xf32>
    %cst_51 = arith.constant 9.99999974E-6 : f32
    %153 = vector.broadcast %cst_51 : f32 to vector<16x1xf32>
    %154 = arith.addf %150, %153 : vector<16x1xf32>
    %155 = math.rsqrt %154 : vector<16x1xf32>
    %156 = vector.broadcast %155 : vector<16x1xf32> to vector<16x128xf32>
    %157 = arith.mulf %152, %156 : vector<16x128xf32>
    %158 = vector.broadcast %137 : vector<1x128xf32> to vector<16x128xf32>
    %159 = arith.mulf %157, %158 : vector<16x128xf32>
    %160 = vector.broadcast %139 : vector<1x128xf32> to vector<16x128xf32>
    %161 = arith.addf %159, %160 : vector<16x128xf32>
    %162 = arith.truncf %161 : vector<16x128xf32> to vector<16x128xbf16>
    %c0_52 = arith.constant 0 : index
    %c0_53 = arith.constant 0 : index
    %c0_54 = arith.constant 0 : index
    %163 = vector.load %arg12[%c0_52, %c0_53, %c0_54] : memref<1x128x512xbf16, #tpu.memory_space<vmem>>, vector<1x128x512xbf16>
    %164 = vector.shape_cast %163 : vector<1x128x512xbf16> to vector<128x512xbf16>
    %cst_55 = arith.constant dense<0.000000e+00> : vector<16x512xf32>
    %165 = tpu.matmul %162, %164, %cst_55 {dimension_numbers = #tpu.dot_dimension_numbers<[1], [0], [0], [1], [0, 0, 1, 1], [], []>} : vector<16x128xbf16>, vector<128x512xbf16>, vector<16x512xf32> -> vector<16x512xf32>
    %c0_56 = arith.constant 0 : index
    %c0_57 = arith.constant 0 : index
    %c0_58 = arith.constant 0 : index
    %166 = vector.load %arg13[%c0_56, %c0_57, %c0_58] : memref<1x1x512xf32, #tpu.memory_space<vmem>>, vector<1x1x512xf32>
    %167 = vector.shape_cast %166 : vector<1x1x512xf32> to vector<1x512xf32>
    %168 = vector.broadcast %167 : vector<1x512xf32> to vector<16x512xf32>
    %169 = arith.addf %165, %168 : vector<16x512xf32>
    %cst_59 = arith.constant 5.000000e-01 : f32
    %170 = vector.broadcast %cst_59 : f32 to vector<16x512xf32>
    %171 = arith.mulf %169, %170 : vector<16x512xf32>
    %cst_60 = arith.constant 0.636619746 : f32
    %172 = math.sqrt %cst_60 : f32
    %cst_61 = arith.constant 4.471500e-02 : f32
    %173 = vector.broadcast %cst_61 : f32 to vector<16x512xf32>
    %174 = arith.mulf %173, %169 : vector<16x512xf32>
    %175 = arith.mulf %174, %169 : vector<16x512xf32>
    %176 = arith.mulf %175, %169 : vector<16x512xf32>
    %177 = arith.addf %169, %176 : vector<16x512xf32>
    %178 = vector.broadcast %172 : f32 to vector<16x512xf32>
    %179 = arith.mulf %178, %177 : vector<16x512xf32>
    %180 = math.tanh %179 : vector<16x512xf32>
    %cst_62 = arith.constant 1.000000e+00 : f32
    %181 = vector.broadcast %cst_62 : f32 to vector<16x512xf32>
    %182 = arith.addf %181, %180 : vector<16x512xf32>
    %183 = arith.mulf %171, %182 : vector<16x512xf32>
    %184 = arith.truncf %183 : vector<16x512xf32> to vector<16x512xbf16>
    %c0_63 = arith.constant 0 : index
    %c0_64 = arith.constant 0 : index
    %c0_65 = arith.constant 0 : index
    %185 = vector.load %arg14[%c0_63, %c0_64, %c0_65] : memref<1x512x128xbf16, #tpu.memory_space<vmem>>, vector<1x512x128xbf16>
    %186 = vector.shape_cast %185 : vector<1x512x128xbf16> to vector<512x128xbf16>
    %cst_66 = arith.constant dense<0.000000e+00> : vector<16x128xf32>
    %187 = tpu.matmul %184, %186, %cst_66 {dimension_numbers = #tpu.dot_dimension_numbers<[1], [0], [0], [1], [0, 0, 1, 1], [], []>} : vector<16x512xbf16>, vector<512x128xbf16>, vector<16x128xf32> -> vector<16x128xf32>
    %c0_67 = arith.constant 0 : index
    %c0_68 = arith.constant 0 : index
    %c0_69 = arith.constant 0 : index
    %188 = vector.load %arg15[%c0_67, %c0_68, %c0_69] : memref<1x1x128xf32, #tpu.memory_space<vmem>>, vector<1x1x128xf32>
    %189 = vector.shape_cast %188 : vector<1x1x128xf32> to vector<1x128xf32>
    %190 = vector.broadcast %189 : vector<1x128xf32> to vector<16x128xf32>
    %191 = arith.addf %187, %190 : vector<16x128xf32>
    %192 = arith.addf %135, %191 : vector<16x128xf32>
    %c1_i32 = arith.constant 1 : i32
    %193 = arith.cmpi slt, %arg0, %c1_i32 : i32
    %194 = arith.extui %193 : i1 to i32
    %c0_i32_70 = arith.constant 0 : i32
    %195 = arith.cmpi ne, %194, %c0_i32_70 : i32
    scf.if %195 {
      %c0_73 = arith.constant 0 : index
      %c0_74 = arith.constant 0 : index
      %199 = vector.load %arg16[%c0_73, %c0_74] : memref<16x128xf32, #tpu.memory_space<vmem>>, vector<16x128xf32>
      tpu.vector_store %arg16[%c0_73, %c0_74], %192 {strides = array<i32>} : memref<16x128xf32, #tpu.memory_space<vmem>>, vector<16x128xf32>,
    } else {
    }
    %c1_i32_71 = arith.constant 1 : i32
    %196 = arith.cmpi eq, %arg0, %c1_i32_71 : i32
    %197 = arith.extui %196 : i1 to i32
    %c0_i32_72 = arith.constant 0 : i32
    %198 = arith.cmpi ne, %197, %c0_i32_72 : i32
    scf.if %198 {
      %c0_73 = arith.constant 0 : index
      %c0_74 = arith.constant 0 : index
      %199 = vector.load %arg3[%c0_73, %c0_74] : memref<1x128xf32, #tpu.memory_space<vmem>>, vector<1x128xf32>
      %c0_75 = arith.constant 0 : index
      %c0_76 = arith.constant 0 : index
      %200 = vector.load %arg4[%c0_75, %c0_76] : memref<1x128xf32, #tpu.memory_space<vmem>>, vector<1x128xf32>
      %cst_77 = arith.constant dense<0.000000e+00> : vector<16xf32>
      %201 = vector.multi_reduction <add>, %192, %cst_77 [1] : vector<16x128xf32> to vector<16xf32>
      %202 = vector.shape_cast %201 : vector<16xf32> to vector<16x1xf32>
      %cst_78 = arith.constant 1.280000e+02 : f32
      %203 = vector.broadcast %cst_78 : f32 to vector<16x1xf32>
      %204 = arith.divf %202, %203 : vector<16x1xf32>
      %205 = vector.broadcast %204 : vector<16x1xf32> to vector<16x128xf32>
      %206 = arith.subf %192, %205 : vector<16x128xf32>
      %207 = arith.mulf %206, %206 : vector<16x128xf32>
      %cst_79 = arith.constant dense<0.000000e+00> : vector<16xf32>
      %208 = vector.multi_reduction <add>, %207, %cst_79 [1] : vector<16x128xf32> to vector<16xf32>
      %209 = vector.shape_cast %208 : vector<16xf32> to vector<16x1xf32>
      %cst_80 = arith.constant 1.280000e+02 : f32
      %210 = vector.broadcast %cst_80 : f32 to vector<16x1xf32>
      %211 = arith.divf %209, %210 : vector<16x1xf32>
      %212 = vector.broadcast %204 : vector<16x1xf32> to vector<16x128xf32>
      %213 = arith.subf %192, %212 : vector<16x128xf32>
      %cst_81 = arith.constant 9.99999974E-6 : f32
      %214 = vector.broadcast %cst_81 : f32 to vector<16x1xf32>
      %215 = arith.addf %211, %214 : vector<16x1xf32>
      %216 = math.rsqrt %215 : vector<16x1xf32>
      %217 = vector.broadcast %216 : vector<16x1xf32> to vector<16x128xf32>
      %218 = arith.mulf %213, %217 : vector<16x128xf32>
      %219 = vector.broadcast %199 : vector<1x128xf32> to vector<16x128xf32>
      %220 = arith.mulf %218, %219 : vector<16x128xf32>
      %221 = vector.broadcast %200 : vector<1x128xf32> to vector<16x128xf32>
      %222 = arith.addf %220, %221 : vector<16x128xf32>
      %c0_82 = arith.constant 0 : index
      %c0_83 = arith.constant 0 : index
      %223 = vector.load %arg16[%c0_82, %c0_83] : memref<16x128xf32, #tpu.memory_space<vmem>>, vector<16x128xf32>
      tpu.vector_store %arg16[%c0_82, %c0_83], %222 {strides = array<i32>} : memref<16x128xf32, #tpu.memory_space<vmem>>, vector<16x128xf32>,
    } else {
    }
    return
  }
  func.func @transform_0(%arg0: i32) -> (i32, i32) {
    %c0_i32 = arith.constant 0 : i32
    %c0_i32_0 = arith.constant 0 : i32
    %c0_i32_1 = arith.constant 0 : i32
    return %c0_i32, %c0_i32_0 : i32, i32
  }
  func.func @transform_1(%arg0: i32) -> (i32, i32) {
    %c0_i32 = arith.constant 0 : i32
    %c0_i32_0 = arith.constant 0 : i32
    %c0_i32_1 = arith.constant 0 : i32
    return %c0_i32, %c0_i32_0 : i32, i32
  }
  func.func @transform_2(%arg0: i32) -> (i32, i32) {
    %c0_i32 = arith.constant 0 : i32
    %c0_i32_0 = arith.constant 0 : i32
    %c0_i32_1 = arith.constant 0 : i32
    return %c0_i32, %c0_i32_0 : i32, i32
  }
  func.func @transform_3(%arg0: i32) -> (i32, i32) {
    %c0_i32 = arith.constant 0 : i32
    %c0_i32_0 = arith.constant 0 : i32
    %c0_i32_1 = arith.constant 0 : i32
    return %c0_i32, %c0_i32_0 : i32, i32
  }
  func.func @transform_4(%arg0: i32) -> (i32, i32, i32) {
    %c0_i32 = arith.constant 0 : i32
    %c0_i32_0 = arith.constant 0 : i32
    %c0_i32_1 = arith.constant 0 : i32
    return %arg0, %c0_i32, %c0_i32_0 : i32, i32, i32
  }
  func.func @transform_5(%arg0: i32) -> (i32, i32, i32) {
    %c0_i32 = arith.constant 0 : i32
    %c0_i32_0 = arith.constant 0 : i32
    %c0_i32_1 = arith.constant 0 : i32
    return %arg0, %c0_i32, %c0_i32_0 : i32, i32, i32
  }
  func.func @transform_6(%arg0: i32) -> (i32, i32, i32) {
    %c0_i32 = arith.constant 0 : i32
    %c0_i32_0 = arith.constant 0 : i32
    %c0_i32_1 = arith.constant 0 : i32
    return %arg0, %c0_i32, %c0_i32_0 : i32, i32, i32
  }
  func.func @transform_7(%arg0: i32) -> (i32, i32, i32) {
    %c0_i32 = arith.constant 0 : i32
    %c0_i32_0 = arith.constant 0 : i32
    %c0_i32_1 = arith.constant 0 : i32
    return %arg0, %c0_i32, %c0_i32_0 : i32, i32, i32
  }
  func.func @transform_8(%arg0: i32) -> (i32, i32, i32) {
    %c0_i32 = arith.constant 0 : i32
    %c0_i32_0 = arith.constant 0 : i32
    %c0_i32_1 = arith.constant 0 : i32
    return %arg0, %c0_i32, %c0_i32_0 : i32, i32, i32
  }
  func.func @transform_9(%arg0: i32) -> (i32, i32, i32) {
    %c0_i32 = arith.constant 0 : i32
    %c0_i32_0 = arith.constant 0 : i32
    %c0_i32_1 = arith.constant 0 : i32
    return %arg0, %c0_i32, %c0_i32_0 : i32, i32, i32
  }
  func.func @transform_10(%arg0: i32) -> (i32, i32, i32) {
    %c0_i32 = arith.constant 0 : i32
    %c0_i32_0 = arith.constant 0 : i32
    %c0_i32_1 = arith.constant 0 : i32
    return %arg0, %c0_i32, %c0_i32_0 : i32, i32, i32
  }
  func.func @transform_11(%arg0: i32) -> (i32, i32, i32) {
    %c0_i32 = arith.constant 0 : i32
    %c0_i32_0 = arith.constant 0 : i32
    %c0_i32_1 = arith.constant 0 : i32
    return %arg0, %c0_i32, %c0_i32_0 : i32, i32, i32
  }
  func.func @transform_12(%arg0: i32) -> (i32, i32, i32) {
    %c0_i32 = arith.constant 0 : i32
    %c0_i32_0 = arith.constant 0 : i32
    %c0_i32_1 = arith.constant 0 : i32
    return %arg0, %c0_i32, %c0_i32_0 : i32, i32, i32
  }
  func.func @transform_13(%arg0: i32) -> (i32, i32, i32) {
    %c0_i32 = arith.constant 0 : i32
    %c0_i32_0 = arith.constant 0 : i32
    %c0_i32_1 = arith.constant 0 : i32
    return %arg0, %c0_i32, %c0_i32_0 : i32, i32, i32
  }
  func.func @transform_14(%arg0: i32) -> (i32, i32, i32) {
    %c0_i32 = arith.constant 0 : i32
    %c0_i32_0 = arith.constant 0 : i32
    %c0_i32_1 = arith.constant 0 : i32
    return %arg0, %c0_i32, %c0_i32_0 : i32, i32, i32
  }
  func.func @transform_15(%arg0: i32) -> (i32, i32) {
    %c0_i32 = arith.constant 0 : i32
    %c0_i32_0 = arith.constant 0 : i32
    %c0_i32_1 = arith.constant 0 : i32
    return %c0_i32, %c0_i32_0 : i32, i32
  }
}

</mosaic_0001>

<bundles_post_ra>
// kernel: tpu_custom_call.1
= control target key start
LH: loop header
LB: loop body
LE: loop exit
PB: predicated region body
PF: predicated region fallthrough
CT: control target
= control target key end

     0   :  { %s4713_s0 = inlined_call_operand.hbm [shape: f32[16,128], index: 0, kind: input, shape index: {}]   ;;  %s4714_s1 = inlined_call_operand.hbm [shape: f32[8,8], index: 1, kind: input, shape index: {}]   ;;  %s4715_s2 = inlined_call_operand.hbm [shape: f32[1,128], index: 2, kind: input, shape index: {}]   ;;  %s4716_s3 = inlined_call_operand.hbm [shape: f32[1,128], index: 3, kind: input, shape index: {}]   ;;  %s4717_s4 = inlined_call_operand.vmem [shape: f32[2,1,128], index: 4, kind: input, shape index: {}]   ;;  %s4718_s5 = inlined_call_operand.hbm [shape: f32[2,1,128], index: 5, kind: input, shape index: {}]   ;;  %s4719_s6 = inlined_call_operand.hbm [shape: bf16[2,128,384], index: 6, kind: input, shape index: {}]   ;;  %s4720_s7 = inlined_call_operand.hbm [shape: bf16[2,128,128], index: 7, kind: input, shape index: {}]   ;;  %s4721_s8 = inlined_call_operand.hbm [shape: f32[2,1,128], index: 8, kind: input, shape index: {}]   ;;  %s4722_s9 = inlined_call_operand.hbm [shape: f32[2,1,128], index: 9, kind: input, shape index: {}]   ;;  %s4723_s10 = inlined_call_operand.hbm [shape: f32[2,1,128], index: 10, kind: input, shape index: {}]   ;;  %s4724_s11 = inlined_call_operand.hbm [shape: bf16[2,128,512], index: 11, kind: input, shape index: {}]   ;;  %s4725_s12 = inlined_call_operand.vmem [shape: f32[2,1,512], index: 12, kind: input, shape index: {}]   ;;  %s4726_s13 = inlined_call_operand.hbm [shape: bf16[2,512,128], index: 13, kind: input, shape index: {}]   ;;  %s4727_s14 = inlined_call_operand.vmem [shape: f32[2,1,128], index: 14, kind: input, shape index: {}]   ;;  %s4728_s15 = inlined_call_operand.hbm [shape: f32[16,128], index: 15, kind: output, shape index: {}]  }
   0x1   :  { %4742 = sst [smem:[#allocation31_spill]] %s4713_s0 }
   0x2   :  { %4743 = sst [smem:[#allocation32_spill]] %s4714_s1 }
   0x3   :  { %4744 = sst [smem:[#allocation33_spill]] %s4715_s2 }
   0x4   :  { %4745 = sst [smem:[#allocation34_spill]] %s4717_s4 }
   0x5   :  { %4746 = sst [smem:[#allocation35_spill]] %s4718_s5 }
   0x6   :  { %4747 = sst [smem:[#allocation36_spill]] %s4725_s12 }
   0x7   :  { %4748 = sst [smem:[#allocation37_spill]] %s4726_s13 }
   0x8   :  { %4749 = sst [smem:[#allocation38_spill]] %s4727_s14 }
   0x9   :  { %4750 = sst [smem:[#allocation39_spill]] %s4728_s15 }
   0xa   :  { %20 = vsyncpa [#allocation3], 0 }
   0xb   :  { %21 = vsyncpa [#allocation6], 0 }
   0xc   :  { %22 = vsyncpa [#allocation9], 0 }
   0xd   :  { %23 = vsyncpa [#allocation4], 0  ;;  %s4022_s18 = smov 0   ;;  %s4024_s19 = smov 0  }
   0xe   :  { %s4026_s20 = smov 0   ;;  %s4028_s21 = smov 0  }
   0xf LB: > { %4751 = sst [smem:[#allocation24_spill]] %s3913_s19  ;;  %s4041_s22 = sadd.s32 4294967295, %s3921_s21   ;;  %s3921_s21 = sphi %s4028_s21, %s4786_s21   ;;  %s3917_s20 = sphi %s4026_s20, %s4789_s20   ;;  %s3913_s19 = sphi %s4024_s19, %s4788_s19   ;;  %s3909_s18 = sphi %s4022_s18, %s4787_s18  }
  0x10   : > { %4752 = sst [smem:[#allocation25_spill]] %s3917_s20  ;;  %s4044_s23 = sadd.s32 1, %s3921_s21  }
  0x11   : > { %4753 = sst [smem:[#allocation26_spill]] %s4041_s22  ;;  %s143_s24 = ssub.s32 %s3921_s21, %s4044_s23 }
  0x12   : > { %4754 = sst [smem:[#allocation27_spill]] %s4044_s23  ;;  %s146_s25 = sadd.s32 1, %s3917_s20 }
  0x13   : > { %p144_p0 = scmp.eq.s32.totalorder %s143_s24, 0  ;;  %p153_p1 = scmp.ne.s32.totalorder %s3917_s20, %s3913_s19 }
  0x14   : > { %p154_p2 = scmp.eq.s32.totalorder %s3921_s21, 0  ;;  %p159_p3 = scmp.ne.s32.totalorder %s3913_s19, %s3909_s18 }
  0x15   : > { %s4054_s26 = scalar_select %p144_p0, %s3917_s20, %s146_s25  }
  0x16   : > { %p4056_p4 = por %p154_p2, %p153_p1  ;;  %p160_p5 = scmp.eq.s32.totalorder %s4041_s22, 0 }
  0x17   : > { %4755 = sst [smem:[#allocation28_spill]] %s4054_s26  ;;  %p2728_p6 = scmp.ge.s32.totalorder %s3921_s21, 1 }
  0x18   : > { %p425_p7 = scmp.lt.s32.totalorder %s3921_s21, 3  ;;  %p4065_p8 = por %p160_p5, %p159_p3 }
  0x19   : > { %p2729_p9 = scmp.ne.s32.totalorder %s4041_s22, 0  ;;  %s4761_s0 = sld [smem:[#allocation31_spill]] }
  0x1a   : > { %s4757_s28 = scalar_select %p4065_p8, 1, 0 }
  0x1b   : > { %p4070_p10 = pnand %p2728_p6, %p425_p7  ;;  %s3923_s18 = smov [#allocation2]  }
  0x1c   : > { %4758 = sst [smem:[#allocation29_spill]] %s4757_s28  ;;  %s438_s24 = sshll.u32 %s3923_s18, 4  ;;  %s439_s24 = int_to_ptr.vmem [resolvable:$true] %s438_s24 }
  0x1d   : > { %s4759_s29 = scalar_select %p4070_p10, 1, 0 }
  0x1e   : > { %p3298_p11 = pneg %p4070_p10  ;;  %p3340_p13 = scmp.lt.s32.totalorder %s3921_s21, 2 }
  0x1f   : > { %4760 = sst [smem:[#allocation30_spill]] %s4759_s29  ;;  %s436_s17 = sshll.u32 %s4761_s0, 4  ;;  %s437_s17 = int_to_ptr.hbm [resolvable:$true] %s436_s17 }
  0x20   : > { %p4081_p12 = pnand %p3298_p11, %p160_p5  ;;  %s494_s26 = sand.u32 1, %s3921_s21  }
  0x21   : > { %s3924_s23 = smov 128   ;;  %s3925_s15 = smov 8  }
  0x22   : > { %3301 = dma.hbm_to_vmem [thread:$0]  (!%p4081_p12), %s437_s17, 256, %s439_s24, [#allocation3], %s3924_s23, %s3924_s23, %s3925_s15  }
  0x23   : > { %p4091_p0 = pnand %p3340_p13, %p4056_p4  ;;  %s4096_s16 = sand.u32 1, %s3917_s20  }
  0x24   : > { %s4764_s5 = sld [smem:[#allocation35_spill]]  ;;  %s497_s4 = scalar_lea.vmem [#allocation10], %s4096_s16 }
  0x25   : > { %s504_s28 = sshll.u32 %s497_s4, 4  ;;  %s4103_s19 = scalar_lea.sflag [#allocation3], %s494_s26  ;;  %s505_s28 = int_to_ptr.vmem [resolvable:$true] %s504_s28 }
  0x26   : > { %p4107_p2 = pneg %p4091_p0 }
  0x2a   : > { %s500_s14 = scalar_lea.hbm %s4764_s5, %s3921_s21  ;;  %s3520_s4 = scalar_lea.hbm %s4764_s5, 2 }
  0x2b   : > { %s502_s12 = sshll.u32 %s500_s14, 4  ;;  %s503_s12 = int_to_ptr.hbm [resolvable:$true] %s502_s12 }
  0x2c   : > { %s3513_s15 = sshra.s32 %s503_s12, 4  ;;  %s3514_s15 = int_to_ptr.hbm [resolvable:$true] %s3513_s15 }
  0x2d   : > { %s3515_s23 = scalar_lea.hbm %s3514_s15, 1  ;;  %p3521_p6 = scmp.lt.s32.totalorder %s3514_s15, %s4764_s5 }
  0x2e   : > { %p3516_p1 = scmp.ne.s32.totalorder %s3514_s15, %s3515_s23  ;;  %p3522_p7 = scmp.lt.s32.totalorder %s3520_s4, %s3515_s23 }
  0x30   : > { %p3518_p3 = pnand %p4107_p2, %p3516_p1  ;;  %p3523_p11 = por %p3522_p7, %p3521_p6 }
  0x32   : > { %p3519_p4 = pneg %p3518_p3 }
  0x34   : > { %p3524_p13 = pnand %p3523_p11, %p3519_p4 }
  0x36   : > { %3527 = shalt.err (!%p3524_p13)
}
  0x37   : > { %3314 = dma.hbm_to_vmem [thread:$0]  (!%p4091_p0), %s503_s12, 16, %s505_s28, %s4103_s19  }
  0x38   : > { %s3259_s24 = smul.u32 192, %s4096_s16  ;;  %s2735_s0 = sshll.u32 %s4096_s16, 6 }
  0x39   : > { %s3260_s18 = smul.u32 192, %s3921_s21  ;;  %s3550_s22 = scalar_lea.hbm %s4719_s6, 384 }
  0x3a   : > { %s515_s15 = scalar_lea.vmem [#allocation11], %s3259_s24 }
  0x3b   : > { %s520_s17 = scalar_lea.hbm %s4719_s6, %s3260_s18  ;;  %s523_s23 = sshll.u32 %s515_s15, 4  ;;  %s524_s23 = int_to_ptr.vmem [resolvable:$true] %s523_s23 }
  0x3c   : > { %s521_s4 = sshll.u32 %s520_s17, 4  ;;  %s522_s4 = int_to_ptr.hbm [resolvable:$true] %s521_s4 }
  0x3d   : > { %s3543_s26 = sshra.s32 %s522_s4, 4  ;;  %s3544_s26 = int_to_ptr.hbm [resolvable:$true] %s3543_s26 }
  0x3e   : > { %s3545_s5 = scalar_lea.hbm %s3544_s26, 192  ;;  %p3551_p6 = scmp.lt.s32.totalorder %s3544_s26, %s4719_s6 }
  0x3f   : > { %p3546_p1 = scmp.ne.s32.totalorder %s3544_s26, %s3545_s5  ;;  %p3552_p7 = scmp.lt.s32.totalorder %s3550_s22, %s3545_s5 }
  0x41   : > { %p3548_p3 = pnand %p3546_p1, %p4107_p2  ;;  %p3553_p11 = por %p3552_p7, %p3551_p6 }
  0x43   : > { %p3549_p4 = pneg %p3548_p3 }
  0x45   : > { %p3554_p13 = pnand %p3553_p11, %p3549_p4 }
  0x47   : > { %3557 = shalt.err (!%p3554_p13)
}
  0x48   : > { %s3926_s20 = smov 192   ;;  %s3927_s24 = smov 12  }
  0x49   : > { %3317 = dma.hbm_to_vmem [thread:$0]  (!%p4091_p0), %s522_s4, 3072, %s524_s23, %s4103_s19, %s3926_s20, %s3926_s20, %s3927_s24  }
  0x4a   : > { %s3160_s18 = sshll.u32 %s3921_s21, 6  ;;  %s537_s14 = scalar_lea.vmem [#allocation12], %s2735_s0 }
  0x4b   : > { %s545_s17 = sshll.u32 %s537_s14, 4  ;;  %s542_s13 = scalar_lea.hbm %s4720_s7, %s3160_s18  ;;  %s546_s17 = int_to_ptr.vmem [resolvable:$true] %s545_s17 }
  0x4c   : > { %s543_s5 = sshll.u32 %s542_s13, 4  ;;  %s3580_s23 = scalar_lea.hbm %s4720_s7, 128  ;;  %s544_s5 = int_to_ptr.hbm [resolvable:$true] %s543_s5 }
  0x4d   : > { %s3573_s22 = sshra.s32 %s544_s5, 4  ;;  %s3574_s22 = int_to_ptr.hbm [resolvable:$true] %s3573_s22 }
  0x4e   : > { %s3575_s29 = scalar_lea.hbm %s3574_s22, 64  ;;  %p3581_p6 = scmp.lt.s32.totalorder %s3574_s22, %s4720_s7 }
  0x4f   : > { %p3576_p1 = scmp.ne.s32.totalorder %s3574_s22, %s3575_s29  ;;  %p3582_p7 = scmp.lt.s32.totalorder %s3580_s23, %s3575_s29 }
  0x51   : > { %p3578_p3 = pnand %p3576_p1, %p4107_p2  ;;  %p3583_p11 = por %p3582_p7, %p3581_p6 }
  0x53   : > { %p3579_p4 = pneg %p3578_p3 }
  0x55   : > { %p3584_p13 = pnand %p3583_p11, %p3579_p4 }
  0x57   : > { %3587 = shalt.err (!%p3584_p13)
}
  0x58   : > { %s4739_s20 = smov 64   ;;  %s4740_s24 = smov 4  }
  0x59   : > { %3320 = dma.hbm_to_vmem [thread:$0]  (!%p4091_p0), %s544_s5, 1024, %s546_s17, %s4103_s19, %s4739_s20, %s4739_s20, %s4740_s24  }
  0x5a   : > { %s561_s15 = scalar_lea.hbm %s4721_s8, %s3921_s21  ;;  %s558_s13 = scalar_lea.vmem [#allocation13], %s4096_s16 }
  0x5b   : > { %s563_s12 = sshll.u32 %s561_s15, 4  ;;  %s565_s22 = sshll.u32 %s558_s13, 4  ;;  %s564_s12 = int_to_ptr.hbm [resolvable:$true] %s563_s12  ;;  %s566_s22 = int_to_ptr.vmem [resolvable:$true] %s565_s22 }
  0x5c   : > { %s3603_s29 = sshra.s32 %s564_s12, 4  ;;  %s3610_s17 = scalar_lea.hbm %s4721_s8, 2  ;;  %s3604_s29 = int_to_ptr.hbm [resolvable:$true] %s3603_s29 }
  0x5d   : > { %s3605_s26 = scalar_lea.hbm %s3604_s29, 1  ;;  %p3611_p6 = scmp.lt.s32.totalorder %s3604_s29, %s4721_s8 }
  0x5e   : > { %p3606_p1 = scmp.ne.s32.totalorder %s3604_s29, %s3605_s26  ;;  %p3612_p7 = scmp.lt.s32.totalorder %s3610_s17, %s3605_s26 }
  0x60   : > { %p3608_p3 = pnand %p3606_p1, %p4107_p2  ;;  %p3613_p11 = por %p3612_p7, %p3611_p6 }
  0x62   : > { %p3609_p4 = pneg %p3608_p3 }
  0x64   : > { %p3614_p13 = pnand %p3613_p11, %p3609_p4 }
  0x66   : > { %3617 = shalt.err (!%p3614_p13)
}
  0x67   : > { %3323 = dma.hbm_to_vmem [thread:$0]  (!%p4091_p0), %s564_s12, 16, %s566_s22, %s4103_s19  }
  0x68   : > { %s578_s14 = scalar_lea.hbm %s4722_s9, %s3921_s21  ;;  %s575_s13 = scalar_lea.vmem [#allocation14], %s4096_s16 }
  0x69   : > { %s580_s15 = sshll.u32 %s578_s14, 4  ;;  %s582_s28 = sshll.u32 %s575_s13, 4  ;;  %s581_s15 = int_to_ptr.hbm [resolvable:$true] %s580_s15  ;;  %s583_s28 = int_to_ptr.vmem [resolvable:$true] %s582_s28 }
  0x6a   : > { %s3633_s29 = sshra.s32 %s581_s15, 4  ;;  %s3640_s12 = scalar_lea.hbm %s4722_s9, 2  ;;  %s3634_s29 = int_to_ptr.hbm [resolvable:$true] %s3633_s29 }
  0x6b   : > { %s3635_s26 = scalar_lea.hbm %s3634_s29, 1  ;;  %p3641_p6 = scmp.lt.s32.totalorder %s3634_s29, %s4722_s9 }
  0x6c   : > { %p3636_p1 = scmp.ne.s32.totalorder %s3634_s29, %s3635_s26  ;;  %p3642_p7 = scmp.lt.s32.totalorder %s3640_s12, %s3635_s26 }
  0x6e   : > { %p3638_p3 = pnand %p3636_p1, %p4107_p2  ;;  %p3643_p11 = por %p3642_p7, %p3641_p6 }
  0x70   : > { %p3639_p4 = pneg %p3638_p3 }
  0x72   : > { %p3644_p13 = pnand %p3643_p11, %p3639_p4 }
  0x74   : > { %3647 = shalt.err (!%p3644_p13)
}
  0x75   : > { %3326 = dma.hbm_to_vmem [thread:$0]  (!%p4091_p0), %s581_s15, 16, %s583_s28, %s4103_s19  }
  0x76   : > { %s595_s18 = scalar_lea.hbm %s4723_s10, %s3921_s21  ;;  %s592_s13 = scalar_lea.vmem [#allocation15], %s4096_s16 }
  0x77   : > { %s597_s14 = sshll.u32 %s595_s18, 4  ;;  %s599_s23 = sshll.u32 %s592_s13, 4  ;;  %s598_s14 = int_to_ptr.hbm [resolvable:$true] %s597_s14  ;;  %s600_s23 = int_to_ptr.vmem [resolvable:$true] %s599_s23 }
  0x78   : > { %s3663_s29 = sshra.s32 %s598_s14, 4  ;;  %s3670_s15 = scalar_lea.hbm %s4723_s10, 2  ;;  %s3664_s29 = int_to_ptr.hbm [resolvable:$true] %s3663_s29 }
  0x79   : > { %s3665_s26 = scalar_lea.hbm %s3664_s29, 1  ;;  %p3671_p6 = scmp.lt.s32.totalorder %s3664_s29, %s4723_s10 }
  0x7a   : > { %p3666_p1 = scmp.ne.s32.totalorder %s3664_s29, %s3665_s26  ;;  %p3672_p7 = scmp.lt.s32.totalorder %s3670_s15, %s3665_s26 }
  0x7c   : > { %p3668_p3 = pnand %p3666_p1, %p4107_p2  ;;  %p3673_p11 = por %p3672_p7, %p3671_p6 }
  0x7e   : > { %p3669_p4 = pneg %p3668_p3 }
  0x80   : > { %p3674_p13 = pnand %p3673_p11, %p3669_p4 }
  0x82   : > { %3677 = shalt.err (!%p3674_p13)
}
  0x83   : > { %3329 = dma.hbm_to_vmem [thread:$0]  (!%p4091_p0), %s598_s14, 16, %s600_s23, %s4103_s19  }
  0x84   : > { %s4766_s1 = sld [smem:[#allocation32_spill]]  ;;  %s3930_s18 = smov [#allocation5]  }
  0x85   : > { %s453_s13 = sshll.u32 %s3930_s18, 4  ;;  %s4741_s29 = sshll.u32 %s4096_s16, 8  ;;  %s454_s13 = int_to_ptr.vmem [resolvable:$true] %s453_s13 }
  0x86   : > { %s3161_s26 = sshll.u32 %s3921_s21, 8  ;;  %s610_s14 = scalar_lea.vmem [#allocation16], %s4741_s29 }
  0x87   : > { %s615_s15 = scalar_lea.hbm %s4724_s11, %s3161_s26  ;;  %s618_s23 = sshll.u32 %s610_s14, 4  ;;  %s619_s23 = int_to_ptr.vmem [resolvable:$true] %s618_s23 }
  0x88   : > { %s616_s28 = sshll.u32 %s615_s15, 4  ;;  %s4767_s2 = sld [smem:[#allocation33_spill]]  ;;  %s617_s28 = int_to_ptr.hbm [resolvable:$true] %s616_s28 }
  0x89   : > { %s3723_s18 = sshra.s32 %s617_s28, 4  ;;  %s3730_s17 = scalar_lea.hbm %s4724_s11, 512  ;;  %s3724_s18 = int_to_ptr.hbm [resolvable:$true] %s3723_s18 }
  0x8a   : > { %s451_s4 = sshll.u32 %s4766_s1, 4  ;;  %s3725_s20 = scalar_lea.hbm %s3724_s18, 256  ;;  %s452_s4 = int_to_ptr.hbm [resolvable:$true] %s451_s4 }
  0x8b   : > { %3304 = dma.hbm_to_vmem [thread:$0]  (!%p4081_p12), %s452_s4, 128, %s454_s13, [#allocation6]  }
  0x8c   : > { %p3726_p1 = scmp.ne.s32.totalorder %s3724_s18, %s3725_s20  ;;  %p3731_p6 = scmp.lt.s32.totalorder %s3724_s18, %s4724_s11 }
  0x8d   : > { %p3732_p7 = scmp.lt.s32.totalorder %s3730_s17, %s3725_s20 }
  0x8e   : > { %s463_s0 = sshll.u32 %s4767_s2, 4  ;;  %p3728_p3 = pnand %p3726_p1, %p4107_p2  ;;  %s464_s0 = int_to_ptr.hbm [resolvable:$true] %s463_s0 }
  0x8f   : > { %p3733_p11 = por %p3732_p7, %p3731_p6 }
  0x90   : > { %p3729_p4 = pneg %p3728_p3 }
  0x92   : > { %p3734_p13 = pnand %p3733_p11, %p3729_p4 }
  0x94   : > { %3737 = shalt.err (!%p3734_p13)
}
  0x95   : > { %s3931_s15 = smov 256   ;;  %s3932_s22 = smov 16  }
  0x96   : > { %3332 = dma.hbm_to_vmem [thread:$0]  (!%p4091_p0), %s617_s28, 4096, %s619_s23, %s4103_s19, %s3931_s15, %s3931_s15, %s3932_s22  }
  0x97   : > { %s3933_s5 = smov [#allocation7]   ;;  %s475_s20 = sshll.u32 %s4716_s3, 4  ;;  %s476_s20 = int_to_ptr.hbm [resolvable:$true] %s475_s20 }
  0x98   : > { %s465_s4 = sshll.u32 %s3933_s5, 4  ;;  %s3934_s18 = smov [#allocation8]   ;;  %s466_s4 = int_to_ptr.vmem [resolvable:$true] %s465_s4 }
  0x99   : > { %3307 = dma.hbm_to_vmem [thread:$0]  (!%p4081_p12), %s464_s0, 16, %s466_s4, [#allocation6]  }
  0x9a   : > { %s477_s17 = sshll.u32 %s3934_s18, 4  ;;  %s4768_s29 = sld [smem:[#allocation37_spill]]  ;;  %s478_s17 = int_to_ptr.vmem [resolvable:$true] %s477_s17 }
  0x9b   : > { %3310 = dma.hbm_to_vmem [thread:$0]  (!%p4081_p12), %s476_s20, 16, %s478_s17, [#allocation9]  }
  0x9c   : > { %s4769_s28 = sshll.u32 %s4096_s16, 8 }
  0x9d   : > { %s639_s15 = scalar_lea.vmem [#allocation17], %s4769_s28 }
  0x9e   : > { %s647_s22 = sshll.u32 %s639_s15, 4  ;;  %s648_s22 = int_to_ptr.vmem [resolvable:$true] %s647_s22 }
  0xa0   : > { %s644_s1 = scalar_lea.hbm %s4768_s29, %s3161_s26  ;;  %s3820_s24 = scalar_lea.hbm %s4768_s29, 512 }
  0xa1   : > { %s645_s23 = sshll.u32 %s644_s1, 4  ;;  %s646_s23 = int_to_ptr.hbm [resolvable:$true] %s645_s23 }
  0xa2   : > { %s3813_s5 = sshra.s32 %s646_s23, 4  ;;  %s3814_s5 = int_to_ptr.hbm [resolvable:$true] %s3813_s5 }
  0xa3   : > { %s3815_s13 = scalar_lea.hbm %s3814_s5, 256  ;;  %p3821_p12 = scmp.lt.s32.totalorder %s3814_s5, %s4768_s29 }
  0xa4   : > { %p3816_p1 = scmp.ne.s32.totalorder %s3814_s5, %s3815_s13  ;;  %p3822_p6 = scmp.lt.s32.totalorder %s3820_s24, %s3815_s13 }
  0xa6   : > { %p3818_p3 = pnand %p3816_p1, %p4107_p2  ;;  %p3823_p7 = por %p3822_p6, %p3821_p12 }
  0xa8   : > { %p3819_p4 = pneg %p3818_p3 }
  0xaa   : > { %p3824_p11 = pnand %p3823_p7, %p3819_p4 }
  0xac   : > { %3827 = shalt.err (!%p3824_p11)
}
  0xad   : > { %s4770_s25 = smov 4   ;;  %s4771_s16 = smov 64  }
  0xae   : > { %3335 = dma.hbm_to_vmem [thread:$0]  (!%p4091_p0), %s646_s23, 4096, %s648_s22, %s4103_s19, %s4771_s16, %s4771_s16, %s4770_s25  }
  0xaf   : > { %665 = sbr.rel (%p4070_p10) target bundleno = 2446 (0x98e), region = 80  ;;  %s4773_s4 = sld [smem:[#allocation26_spill]] (!%p4070_p10) }
  0xb4   : > { %3888 = dma.done.wait (%p160_p5), [#allocation3], 256  }
  0xb5   : > { %3890 = vsyncadd (%p160_p5), [#allocation3], 4294967040 }
  0xb6   : > { %3892 = dma.done.wait (%p160_p5), [#allocation6], 144  }
  0xb7   : > { %3894 = vsyncadd (%p160_p5), [#allocation6], 4294967152 }
  0xb8   : > { %3896 = dma.done.wait (%p160_p5), [#allocation9], 16  }
  0xb9   : > { %3898 = vsyncadd (%p160_p5), [#allocation9], 4294967280  ;;  %s4774_s19 = sld [smem:[#allocation24_spill]]  ;;  %s687_s12 = sand.u32 1, %s4773_s4  }
  0xba   : > { %s688_s18 = scalar_lea.sflag [#allocation3], %s687_s12 }
  0xbf   : > { %s4277_s20 = sand.u32 1, %s4774_s19  }
  0xc0   : > { %3900 = dma.done.wait (%p4065_p8), %s688_s18, 12352  }
  0xc1   : > { %3902 = vsyncadd (%p4065_p8), %s688_s18, 4294954944  ;;  %s3261_s14 = smul.u32 192, %s4277_s20  ;;  %s2749_s23 = sshll.u32 %s4277_s20, 6 }
  0xc2   : > { %s2750_s28 = sshll.u32 %s4277_s20, 8  ;;  %p841_p5 = scmp.lt.s32.totalorder %s4773_s4, 1 }
  0xc3   : > { %s4776_s13 = sld [smem:[#allocation34_spill]]  ;;  %s4305_s12 = scalar_lea.vmem [#allocation11], %s3261_s14 }
  0xc4   : > { %s4289_s15 = scalar_select %p841_p5, %s4773_s4, 1 }
  0xc5   : > { %s4777_s1 = sld [smem:[#allocation36_spill]]  ;;  %s4307_s18 = scalar_lea.vmem [#allocation12], %s2749_s23 }
  0xc6   : > { %s2752_s0 = sshll.u32 %s4289_s15, 2  ;;  %s4778_s19 = sld [smem:[#allocation38_spill]] }
  0xc7   : > { %s719_s17 = scalar_lea.vmem [#allocation13], %s4277_s20  ;;  %s728_s2 = scalar_lea.vmem [#allocation14], %s4277_s20 }
  0xc8   : > { %s737_s22 = scalar_lea.vmem [#allocation15], %s4277_s20  ;;  %s4312_s5 = scalar_lea.vmem [#allocation16], %s2750_s28 }
  0xc9   : > { %s843_s21 = scalar_lea.vmem %s4776_s13, %s4289_s15  ;;  %s4314_s13 = scalar_lea.vmem [#allocation17], %s2750_s28 }
  0xca   : > { %855 = sbr.rel (%p2729_p9) target bundleno = 210 (0xd2), region = 132 }
  0xcb   : > { %s4299_s25 = scalar_lea.vmem %s4777_s1, %s2752_s0 }
  0xcc   : > { %s850_s30 = scalar_lea.vmem %s4778_s19, %s4289_s15 }
  0xcf   : > { %v856_v0 = vld [vmem:[#allocation2] sm:$0xff]  ;;  %v857_v1 = vld [vmem:[#allocation2 + $0x8] sm:$0xff] }
  0xd0   : > { %858 = vst [vmem:[#allocation18] sm:$0xff] %v856_v0 }
  0xd1   : > { %859 = vst [vmem:[#allocation18 + $0x8] sm:$0xff] %v857_v1 }
  0xd2 PF: > { %v3935_v4 = vmov 128.0   ;;  %v2840_v19 = vld [vmem:[%s4305_s12 + $0xa8] sm:$0xf]  ;;  %v3185_v20 = vld [vmem:[%s4305_s12 + $0xb0] sm:$0xf0]  ;;  %s4780_s28 = scalar_lea.vmem [#allocation10], %s4277_s20 }
  0xd3   : > { %3419 = vrcp.f32 %v3935_v4  ;;  %v3184_v21 = vld [vmem:[%s4305_s12 + $0xac] sm:$0xf]  ;;  %v2841_v22 = vor.u32 %v3185_v20, %v2840_v19  ;;  %v2842_v23 = vld [vmem:[%s4305_s12 + $0xb4] sm:$0xf0]  ;;  %v2848_v24 = vld [vmem:[%s4305_s12 + $0xb0] sm:$0xf] }
  0xd4   : > { %v3186_v25 = vld [vmem:[%s4305_s12 + $0xb8] sm:$0xf0]  ;;  %v2845_v26 = vor.u32 %v3184_v21, %v2842_v23  ;;  %v2828_v28 = vld [vmem:[%s4305_s12 + $0x90] sm:$0xf]  ;;  %v3181_v30 = vld [vmem:[%s4305_s12 + $0x94] sm:$0xf] }
  0xd5   : > { %v2849_v27 = vor.u32 %v3186_v25, %v2848_v24  ;;  %1082 = vmatpush.bf16.msra.mxu0 %v2841_v22  ;;  %v3182_v29 = vld [vmem:[%s4305_s12 + $0x98] sm:$0xf0]  ;;  %v2830_v32 = vld [vmem:[%s4305_s12 + $0x9c] sm:$0xf0]  ;;  %v2836_v33 = vld [vmem:[%s4305_s12 + $0x98] sm:$0xf] }
  0xd6   : > { %1096 = vmatpush.bf16.msra.mxu1 %v2845_v26  ;;  %v2829_v31 = vor.u32 %v3182_v29, %v2828_v28  ;;  %v3183_v34 = vld [vmem:[%s4305_s12 + $0xa0] sm:$0xf0]  ;;  %v2833_v35 = vor.u32 %v3181_v30, %v2830_v32  ;;  %v2816_v37 = vld [vmem:[%s4305_s12 + $0x78] sm:$0xf]  ;;  %v3178_v39 = vld [vmem:[%s4305_s12 + $0x7c] sm:$0xf] }
  0xd7   : > { %v4318_v2 = vld [vmem:[#allocation18] sm:$0xff]  ;;  %1110 = vmatpush.bf16.msra.mxu2 %v2849_v27  ;;  %v2837_v36 = vor.u32 %v3183_v34, %v2836_v33  ;;  %v2824_v42 = vld [vmem:[%s4305_s12 + $0x80] sm:$0xf]  ;;  %v2806_v50 = vld [vmem:[%s4305_s12 + $0x6c] sm:$0xf0]  ;;  %vm1133_vm7 = vcmask 261120  }
  0xd8   : > { %864 = vadd.xlane.f32.xlu0 %v4318_v2  ;;  %v4321_v3 = vld [vmem:[#allocation18 + $0x8] sm:$0xff]  ;;  %v3179_v38 = vld [vmem:[%s4305_s12 + $0x80] sm:$0xf0]  ;;  %v2818_v41 = vld [vmem:[%s4305_s12 + $0x84] sm:$0xf0]  ;;  %vm1200_vm8 = vcmask 1043456  }
  0xd9   : > { %v3420_v5 = vpop.eup %3419  ;;  %1083 = vmatpush.bf16.msra.mxu0 %v2829_v31  ;;  %v2817_v40 = vor.u32 %v3179_v38, %v2816_v37  ;;  %v3180_v43 = vld [vmem:[%s4305_s12 + $0x88] sm:$0xf0]  ;;  %v2821_v44 = vor.u32 %v3178_v39, %v2818_v41  ;;  %v2804_v46 = vld [vmem:[%s4305_s12 + $0x60] sm:$0xf]  ;;  %v3175_v48 = vld [vmem:[%s4305_s12 + $0x64] sm:$0xf] }
  0xda   : > { %v869_v6 = vmul.f32 128.0, %v3420_v5  ;;  %vm873_vm0 = vweird.f32 %v3420_v5  ;;  %1097 = vmatpush.bf16.msra.mxu1 %v2833_v35  ;;  %v2825_v45 = vor.u32 %v3180_v43, %v2824_v42  ;;  %v3176_v47 = vld [vmem:[%s4305_s12 + $0x68] sm:$0xf0]  ;;  %v2812_v51 = vld [vmem:[%s4305_s12 + $0x68] sm:$0xf]  ;;  %v2809_v53 = vor.u32 %v3175_v48, %v2806_v50  ;;  %s3937_s0 = smov 64  }
  0xdb   : > { %1111 = vmatpush.bf16.msra.mxu2 %v2837_v36  ;;  %v2805_v49 = vor.u32 %v3176_v47, %v2804_v46  ;;  %v3177_v52 = vld [vmem:[%s4305_s12 + $0x70] sm:$0xf0]  ;;  %v2792_v55 = vld [vmem:[%s4305_s12 + $0x48] sm:$0xf]  ;;  %v3172_v57 = vld [vmem:[%s4305_s12 + $0x4c] sm:$0xf] }
  0xdc   : > { %v870_v7 = vsub.f32 1.0, %v869_v6  ;;  %v2813_v54 = vor.u32 %v3177_v52, %v2812_v51  ;;  %v3173_v56 = vld [vmem:[%s4305_s12 + $0x50] sm:$0xf0]  ;;  %v2794_v59 = vld [vmem:[%s4305_s12 + $0x54] sm:$0xf0]  ;;  %s3938_s24 = smov 32  }
  0xdd   : > { %1084 = vmatpush.bf16.msra.mxu0 %v2817_v40  ;;  %v2793_v58 = vor.u32 %v3173_v56, %v2792_v55  ;;  %v2800_v60 = vld [vmem:[%s4305_s12 + $0x50] sm:$0xf]  ;;  %v3174_v61 = vld [vmem:[%s4305_s12 + $0x58] sm:$0xf0]  ;;  %v2797_v62 = vor.u32 %v3172_v57, %v2794_v59  ;;  %v3169_v4 = vld [vmem:[%s4305_s12 + $0x34] sm:$0xf] }
  0xde   : > { %v871_v8 = vmul.f32 %v3420_v5, %v870_v7  ;;  %1098 = vmatpush.bf16.msra.mxu1 %v2821_v44  ;;  %v2801_v63 = vor.u32 %v3174_v61, %v2800_v60  ;;  %v2780_v0 = vld [vmem:[%s4305_s12 + $0x30] sm:$0xf]  ;;  %v3170_v1 = vld [vmem:[%s4305_s12 + $0x38] sm:$0xf0]  ;;  %v2782_v6 = vld [vmem:[%s4305_s12 + $0x3c] sm:$0xf0] }
  0xdf   : > { %1112 = vmatpush.bf16.msra.mxu2 %v2825_v45  ;;  %v2788_v7 = vld [vmem:[%s4305_s12 + $0x38] sm:$0xf]  ;;  %v2776_v19 = vld [vmem:[%s4305_s12 + $0x20] sm:$0xf]  ;;  %v3168_v20 = vld [vmem:[%s4305_s12 + $0x28] sm:$0xf0] }
  0xe0   : > { %866 = vadd.xlane.f32.xlu0 %v4321_v3  ;;  %v872_v9 = vadd.f32 %v3420_v5, %v871_v8  ;;  %v3171_v8 = vld [vmem:[%s4305_s12 + $0x40] sm:$0xf0]  ;;  %v2777_v22 = vor.u32 %v3168_v20, %v2776_v19  ;;  %v2756_v23 = vld [vmem:[%s4305_s12] sm:$0xf]  ;;  %v3164_v24 = vld [vmem:[%s4305_s12 + $0x8] sm:$0xf0] }
  0xe1   : > { %1085 = vmatpush.bf16.msra.mxu0 %v2805_v49  ;;  %v3163_v25 = vld [vmem:[%s4305_s12 + $0x4] sm:$0xf]  ;;  %v2757_v27 = vor.u32 %v3164_v24, %v2756_v23  ;;  %v2758_v28 = vld [vmem:[%s4305_s12 + $0xc] sm:$0xf0]  ;;  %v2764_v29 = vld [vmem:[%s4305_s12 + $0x8] sm:$0xf] }
  0xe2   : > { %v4324_v10 = vsel %vm873_vm0, %v3420_v5, %v872_v9  ;;  %1099 = vmatpush.bf16.msra.mxu1 %v2809_v53  ;;  %v2781_v5 = vor.u32 %v3170_v1, %v2780_v0  ;;  %v2785_v9 = vor.u32 %v3169_v4, %v2782_v6  ;;  %v3165_v30 = vld [vmem:[%s4305_s12 + $0x10] sm:$0xf0]  ;;  %v2761_v32 = vor.u32 %v3163_v25, %v2758_v28  ;;  %v3413_v51 = vld [vmem:[%s843_s21] ss:$0 sm:$0xff]  ;;  %s3936_s21 = smov 96   ;;  %s4782_s15 = sld [smem:[#allocation26_spill]] }
  0xe3   : > { %1113 = vmatpush.bf16.msra.mxu2 %v2813_v54  ;;  %v2765_v33 = vor.u32 %v3165_v30, %v2764_v29  ;;  %v3414_v56 = vld [vmem:[%s4780_s28] ss:$0 sm:$0xff]  ;;  %vm1172_vm9 = vcmask 64512   ;;  %vm1614_vm10 = vcmask 523264   ;;  %vm1617_vm11 = vcmask 785408  }
  0xe5   : > { %1086 = vmatpush.bf16.msra.mxu0 %v2793_v58 }
  0xe6   : > { %1100 = vmatpush.bf16.msra.mxu1 %v2797_v62 }
  0xe7   : > { %1114 = vmatpush.bf16.msra.mxu2 %v2801_v63 }
  0xe8   : > { %p3154_p8 = scmp.ge.s32.totalorder %s4782_s15, 1 }
  0xe9   : > { %1087 = vmatpush.bf16.msra.mxu0 %v2781_v5 }
  0xea   : > { %1101 = vmatpush.bf16.msra.mxu1 %v2785_v9 }
 0x14b   : > { %v865_v11 = vpop.xlane.xlu0 %864 }
 0x14c   : > { %v875_v12 = vmul.f32 %v4324_v10, %v865_v11  ;;  %v2789_v11 = vor.u32 %v3171_v8, %v2788_v7 }
 0x14e   : > { %v4328_v13 = vsub.f32 %v4318_v2, %v875_v12  ;;  %1115 = vmatpush.bf16.msra.mxu2 %v2789_v11  ;;  %v2768_v12 = vld [vmem:[%s4305_s12 + $0x18] sm:$0xf] }
 0x150   : > { %v879_v14 = vmul.f32 %v4328_v13, %v4328_v13 }
 0x152   : > { %881 = vadd.xlane.f32.xlu1 %v879_v14  ;;  %v3167_v14 = vld [vmem:[%s4305_s12 + $0x20] sm:$0xf0]  ;;  %1116 = vmatpush.bf16.msra.mxu2 %v2777_v22 }
 0x153   : > { %v867_v15 = vpop.xlane.xlu0 %866 }
 0x154   : > { %v876_v16 = vmul.f32 %v4324_v10, %v867_v15  ;;  %v3166_v15 = vld [vmem:[%s4305_s12 + $0x1c] sm:$0xf] }
 0x156   : > { %v4334_v17 = vsub.f32 %v4321_v3, %v876_v16  ;;  %v2769_v16 = vor.u32 %v3167_v14, %v2768_v12  ;;  %1117 = vmatpush.bf16.msra.mxu2 %v2765_v33 }
 0x158   : > { %v880_v18 = vmul.f32 %v4334_v17, %v4334_v17  ;;  %1088 = vmatpush.bf16.msra.mxu0 %v2769_v16 }
 0x15a   : > { %883 = vadd.xlane.f32.xlu1 %v880_v18  ;;  %v2770_v18 = vld [vmem:[%s4305_s12 + $0x24] sm:$0xf0] }
 0x15b   : > { %v2773_v21 = vor.u32 %v3166_v15, %v2770_v18 }
 0x15c   : > { %1089 = vmatpush.bf16.msra.mxu0 %v2757_v27 }
 0x15d   : > { %1102 = vmatpush.bf16.msra.mxu1 %v2773_v21 }
 0x161   : > { %1103 = vmatpush.bf16.msra.mxu1 %v2761_v32 }
 0x1c5   : > { %v882_v26 = vpop.xlane.xlu1 %881 }
 0x1c6   : > { %v885_v31 = vmul.f32 %v882_v26, %v4324_v10 }
 0x1c8   : > { %v887_v34 = vadd.f32 1e-05, %v885_v31 }
 0x1ca   : > { %3421 = vrsqrt.f32 %v887_v34  ;;  %vm895_vm2 = vweird.f32 %v887_v34 }
 0x1cd   : > { %v884_v35 = vpop.xlane.xlu1 %883 }
 0x1ce   : > { %v886_v36 = vmul.f32 %v884_v35, %v4324_v10 }
 0x1d0   : > { %v3422_v37 = vpop.eup %3421  ;;  %v888_v38 = vadd.f32 1e-05, %v886_v36 }
 0x1d1   : > { %v890_v39 = vmul.f32 %v3422_v37, %v887_v34  ;;  %vm896_vm1 = vweird.f32 %v3422_v37 }
 0x1d2   : > { %3423 = vrsqrt.f32 %v888_v38  ;;  %vm897_vm3 = vmor %vm895_vm2, %vm896_vm1  ;;  %vm905_vm5 = vweird.f32 %v888_v38 }
 0x1d3   : > { %v891_v40 = vmul.f32 %v3422_v37, %v890_v39 }
 0x1d5   : > { %v892_v41 = vmul.f32 0.5, %v891_v40 }
 0x1d7   : > { %v893_v42 = vsub.f32 1.5, %v892_v41 }
 0x1d8   : > { %v3424_v43 = vpop.eup %3423 }
 0x1d9   : > { %v894_v44 = vmul.f32 %v3422_v37, %v893_v42  ;;  %v900_v45 = vmul.f32 %v3424_v43, %v888_v38  ;;  %vm906_vm4 = vweird.f32 %v3424_v43  ;;  %v4430_v42 = vld [vmem:[#allocation5] sm:$0xff] }
 0x1da   : > { %vm907_vm6 = vmor %vm905_vm5, %vm906_vm4 }
 0x1db   : > { %v901_v46 = vmul.f32 %v3424_v43, %v900_v45  ;;  %v898_v47 = vsel %vm897_vm3, %v3422_v37, %v894_v44 }
 0x1dc   : > { %v909_v50 = vmul.f32 %v898_v47, %v4328_v13 }
 0x1dd   : > { %v902_v48 = vmul.f32 0.5, %v901_v46 }
 0x1de   : > { %v914_v55 = vmul.f32 %v3413_v51, %v909_v50 }
 0x1df   : > { %v903_v49 = vsub.f32 1.5, %v902_v48 }
 0x1e0   : > { %v919_v58 = vadd.f32 %v3414_v56, %v914_v55 }
 0x1e1   : > { %v904_v52 = vmul.f32 %v3424_v43, %v903_v49 }
 0x1e3   : > { %v908_v53 = vsel %vm907_vm6, %v3424_v43, %v904_v52 }
 0x1e4   : > { %v910_v54 = vmul.f32 %v908_v53, %v4334_v17 }
 0x1e6   : > { %v915_v57 = vmul.f32 %v3413_v51, %v910_v54 }
 0x1e8   : > { %v920_v59 = vadd.f32 %v3414_v56, %v915_v57 }
 0x1ea   : > { %v921_v60 = vpack.c.bf16 %v920_v59, %v919_v58 }
 0x1ec   : > { %1090 = vmatmul.bf16.vlgmr.msra.gmra.mxu0 %v921_v60  ;;  %1104 = vmatmul.bf16.vlgmr.msra.gmra.mxu1 %v921_v60 }
 0x1ed   : > { %1118 = vmatmul.bf16.vlgmr.msra.gmra.mxu2 %v921_v60 }
 0x269   : > { %v1091_v13 = vpop.f32.mrf.mxu0  ;;  %v1105_v61 = vpop.f32.mrf.mxu1 }
 0x26a   : > { %v1124_v62 = vpack.c.bf16 %v1105_v61, %v1091_v13 }
 0x26c   : > { %1236 = vrot.lane.b32.xlu2 %v1124_v62, %s3936_s21  ;;  %v1131_v63 = vrot.slane %v1124_v62, 4  ;;  %v1242_v0 = vunpack.c.l.b16 %v1124_v62 }
 0x26e   : > { %v1138_v17 = vsel %vm1133_vm7, %v1131_v63, 0  ;;  %v1243_v7 = vpack.c.b16 %v1242_v0, %v1242_v0 }
 0x26f   : > { %1147 = vmatpush.bf16.xpose.msra.mxu3 %v1138_v17 }
 0x270   : > { %v1119_v1 = vpop.f32.mrf.mxu2 }
 0x271   : > { %v1093_v4 = vpop.f32.mrf.mxu0  ;;  %v1107_v5 = vpop.f32.mrf.mxu1  ;;  %v4399_v8 = vpack.c.bf16 %v1119_v1, %v1119_v1 }
 0x272   : > { %v1126_v6 = vpack.c.bf16 %v1107_v5, %v1093_v4 }
 0x273   : > { %v1202_v15 = vsel %vm1200_vm8, %v4399_v8, 0  ;;  %v1313_v60 = vunpack.c.l.b16 %v4399_v8 }
 0x274   : > { %1244 = vrot.lane.b32.xlu2 %v1243_v7, %s3936_s21  ;;  %1238 = vrot.lane.b32.xlu0 %v1126_v6, %s3936_s21  ;;  %v1132_v9 = vrot.slane %v1126_v6, 4  ;;  %v1265_v11 = vunpack.c.l.b16 %v1126_v6 }
 0x275   : > { %v4444_v61 = vpack.c.b16 %v1313_v60, %v1313_v60 }
 0x276   : > { %2850 = vmatmul.msk.bf16.vlgmr.msra.gmra.mxu3 %vm1133_vm7, %v1124_v62  ;;  %v1157_v12 = vsel %vm1133_vm7, %v1132_v9, 0  ;;  %v1266_v14 = vpack.c.b16 %v1265_v11, %v1265_v11 }
 0x277   : > { %1166 = vmatpush.bf16.xpose.msrb.mxu3 %v1157_v12 }
 0x278   : > { %v1121_v16 = vpop.f32.mrf.mxu2  ;;  %1267 = vrot.lane.b32.xlu1 %v1266_v14, %s3936_s21 }
 0x279   : > { %v4408_v18 = vpack.c.bf16 %v1121_v16, %v1121_v16 }
 0x27b   : > { %v1221_v19 = vsel %vm1200_vm8, %v4408_v18, 0 }
 0x27c   : > { %1230 = vmatpush.bf16.msrb.mxu0 %v1221_v19  ;;  %1360 = vrot.lane.b32.xlu2 %v1124_v62, %s3937_s0 }
 0x27d   : > { %1387 = vrot.lane.b32.xlu0 %v1266_v14, %s3937_s0 }
 0x27f   : > { %1211 = vmatpush.bf16.msra.mxu3 %v1202_v15 }
 0x280   : > { %1476 = vrot.lane.b32.xlu1 %v1126_v6, %s3938_s24 }
 0x284   : > { %1362 = vrot.lane.b32.xlu2 %v1126_v6, %s3937_s0 }
 0x285   : > { %1480 = vrot.lane.b32.xlu0 %v1243_v7, %s3938_s24 }
 0x286   : > { %2851 = vmatmul.msk.bf16.vlgmr.msrb.gmra.mxu3 %vm1133_vm7, %v1126_v6 }
 0x28c   : > { %1366 = vrot.lane.b32.xlu2 %v1243_v7, %s3937_s0 }
 0x294   : > { %1474 = vrot.lane.b32.xlu2 %v1124_v62, %s3938_s24 }
 0x29c   : > { %1501 = vrot.lane.b32.xlu2 %v1266_v14, %s3938_s24 }
 0x2c6   : > { %v1237_v20 = vpop.permute.xlu2 %1236 }
 0x2c7   : > { %v1240_v21 = vrot.slane %v1237_v20, 4 }
 0x2c9   : > { %v1250_v22 = vsel %vm1133_vm7, %v1240_v21, 0  ;;  %v1337_v21 = vunpack.c.l.b16 %v4408_v18 }
 0x2ca   : > { %1259 = vmatpush.bf16.xpose.msrb.mxu2 %v1250_v22 }
 0x2ce   : > { %v1245_v23 = vpop.permute.xlu2 %1244 }
 0x2d1   : > { %2854 = vmatmul.msk.bf16.vlgmr.msrb.gmra.mxu2 %vm1133_vm7, %v1245_v23 }
 0x2d6   : > { %v1361_v24 = vpop.permute.xlu2 %1360 }
 0x2d7   : > { %v1364_v25 = vrot.slane %v1361_v24, 4  ;;  %v4455_v24 = vpack.c.b16 %v1337_v21, %v1337_v21 }
 0x2d9   : > { %v1372_v26 = vsel %vm1133_vm7, %v1364_v25, 0 }
 0x2da   : > { %1381 = vmatpush.bf16.xpose.msrb.mxu1 %v1372_v26 }
 0x2de   : > { %v1363_v27 = vpop.permute.xlu2 %1362 }
 0x2df   : > { %v1365_v28 = vrot.slane %v1363_v27, 4 }
 0x2e1   : > { %v1393_v33 = vsel %vm1133_vm7, %v1365_v28, 0 }
 0x2e6   : > { %v1367_v29 = vpop.permute.xlu2 %1366  ;;  %v1239_v30 = vpop.permute.xlu0 %1238 }
 0x2e7   : > { %v1241_v31 = vrot.slane %v1239_v30, 4  ;;  %2858 = vmatmul.msk.bf16.vlgmr.msrb.gmra.mxu1 %vm1133_vm7, %v1367_v29 }
 0x2e9   : > { %v1273_v32 = vsel %vm1133_vm7, %v1241_v31, 0 }
 0x2ea   : > { %1282 = vmatpush.bf16.xpose.msra.mxu2 %v1273_v32  ;;  %v1268_v34 = vpop.permute.xlu1 %1267 }
 0x2ee   : > { %v1475_v35 = vpop.permute.xlu2 %1474 }
 0x2ef   : > { %v1478_v36 = vrot.slane %v1475_v35, 4  ;;  %v1388_v37 = vpop.permute.xlu0 %1387 }
 0x2f1   : > { %v1486_v38 = vsel %vm1133_vm7, %v1478_v36, 0  ;;  %2855 = vmatmul.msk.bf16.vlgmr.msra.gmra.mxu2 %vm1133_vm7, %v1268_v34 }
 0x2f2   : > { %1402 = vmatpush.bf16.xpose.msrb.mxu2 %v1393_v33  ;;  %1495 = vmatpush.bf16.xpose.msra.mxu1 %v1486_v38  ;;  %v1477_v39 = vpop.permute.xlu1 %1476 }
 0x2f3   : > { %v1479_v40 = vrot.slane %v1477_v39, 4 }
 0x2f5   : > { %v1507_v41 = vsel %vm1133_vm7, %v1479_v40, 0 }
 0x2f6   : > { %v1502_v51 = vpop.permute.xlu2 %1501 }
 0x2f7   : > { %v1481_v43 = vpop.permute.xlu0 %1480 }
 0x2f9   : > { %v1149_v44 = vpop.f32.mrf.mxu3  ;;  %2862 = vmatmul.msk.bf16.vlgmr.msra.gmra.mxu1 %vm1133_vm7, %v1481_v43 }
 0x2fa   : > { %1516 = vmatpush.bf16.xpose.msra.mxu2 %v1507_v41  ;;  %v1150_v45 = vadd.f32 %v1149_v44, %v4430_v42 }
 0x2fc   : > { %v1173_v46 = vsel %vm1172_vm9, %v1150_v45, -inf }
 0x2fd   : > { %1174 = vmax.xlane.f32.xlu1 %v1173_v46 }
 0x301   : > { %v1151_v47 = vpop.f32.mrf.mxu3  ;;  %2859 = vmatmul.msk.bf16.vlgmr.msrb.gmra.mxu2 %vm1133_vm7, %v1388_v37 }
 0x309   : > { %v1168_v48 = vpop.f32.mrf.mxu3 }
 0x30a   : > { %v1169_v49 = vadd.f32 %v1168_v48, %v4430_v42 }
 0x30c   : > { %v1176_v50 = vsel %vm1172_vm9, %v1169_v49, -inf }
 0x30d   : > { %1177 = vmax.xlane.f32.xlu0 %v1176_v50 }
 0x311   : > { %v1170_v52 = vpop.f32.mrf.mxu3  ;;  %2863 = vmatmul.msk.bf16.vlgmr.msra.gmra.mxu2 %vm1133_vm7, %v1502_v51 }
 0x354   : > { %v1261_v53 = vpop.f32.mrf.mxu2 }
 0x355   : > { %v1262_v54 = vadd.f32 %v1261_v53, %v4430_v42 }
 0x357   : > { %v1288_v55 = vsel %vm1172_vm9, %v1262_v54, -inf }
 0x358   : > { %1289 = vmax.xlane.f32.xlu2 %v1288_v55 }
 0x35c   : > { %v1263_v56 = vpop.f32.mrf.mxu2 }
 0x364   : > { %v1383_v57 = vpop.f32.mrf.mxu1 }
 0x365   : > { %v1384_v58 = vadd.f32 %v1383_v57, %v4430_v42 }
 0x367   : > { %v1408_v59 = vsel %vm1172_vm9, %v1384_v58, -inf }
 0x368   : > { %1409 = vmax.xlane.f32.xlu0 %v1408_v59 }
 0x36c   : > { %v1385_v13 = vpop.f32.mrf.mxu1 }
 0x370   : > { %1432 = vrot.lane.b32.xlu2 %v4444_v61, %s3937_s0  ;;  %v1175_v62 = vpop.xlane.xlu1 %1174 }
 0x371   : > { %v1179_v63 = vsub.f32 %v1150_v45, %v1175_v62 }
 0x373   : > { %v1181_v17 = vmul.f32 1.442695, %v1179_v63 }
 0x374   : > { %v1284_v0 = vpop.f32.mrf.mxu2 }
 0x375   : > { %3425 = vpow2.f32 %v1181_v17  ;;  %v1285_v1 = vadd.f32 %v1284_v0, %v4430_v42 }
 0x376   : > { %v1497_v4 = vpop.f32.mrf.mxu1 }
 0x377   : > { %v1291_v5 = vsel %vm1172_vm9, %v1285_v1, -inf  ;;  %v1498_v7 = vadd.f32 %v1497_v4, %v4430_v42 }
 0x378   : > { %1292 = vmax.xlane.f32.xlu1 %v1291_v5 }
 0x379   : > { %v1522_v12 = vsel %vm1172_vm9, %v1498_v7, -inf }
 0x37b   : > { %v3426_v6 = vpop.eup %3425 }
 0x37c   : > { %v1286_v8 = vpop.f32.mrf.mxu2  ;;  %v1185_v9 = vsel %vm1172_vm9, %v3426_v6, 0.0 }
 0x37d   : > { %1186 = vadd.xlane.f32.xlu0 %v1185_v9 }
 0x37e   : > { %v1499_v11 = vpop.f32.mrf.mxu1 }
 0x380   : > { %1523 = vmax.xlane.f32.xlu1 %v1522_v12  ;;  %v1178_v14 = vpop.xlane.xlu0 %1177 }
 0x381   : > { %v1180_v15 = vsub.f32 %v1169_v49, %v1178_v14 }
 0x383   : > { %v1183_v16 = vmul.f32 1.442695, %v1180_v15 }
 0x384   : > { %v1404_v19 = vpop.f32.mrf.mxu2 }
 0x385   : > { %3427 = vpow2.f32 %v1183_v16  ;;  %v1405_v25 = vadd.f32 %v1404_v19, %v4430_v42 }
 0x387   : > { %v1411_v27 = vsel %vm1172_vm9, %v1405_v25, -inf }
 0x38b   : > { %v3428_v20 = vpop.eup %3427 }
 0x38c   : > { %v1406_v22 = vpop.f32.mrf.mxu2  ;;  %v1188_v23 = vsel %vm1172_vm9, %v3428_v20, 0.0 }
 0x38d   : > { %1189 = vadd.xlane.f32.xlu1 %v1188_v23 }
 0x391   : > { %1339 = vrot.lane.b32.xlu0 %v4455_v24, %s3936_s21 }
 0x394   : > { %v1518_v26 = vpop.f32.mrf.mxu2 }
 0x395   : > { %v1519_v28 = vadd.f32 %v1518_v26, %v4430_v42 }
 0x397   : > { %v1525_v18 = vsel %vm1172_vm9, %v1519_v28, -inf }
 0x399   : > { %1412 = vmax.xlane.f32.xlu2 %v1411_v27 }
 0x39c   : > { %v1520_v29 = vpop.f32.mrf.mxu2 }
 0x3a1   : > { %1526 = vmax.xlane.f32.xlu2 %v1525_v18 }
 0x3a6   : > { %1315 = vrot.lane.b32.xlu1 %v4444_v61, %s3936_s21 }
 0x3cb   : > { %v1290_v30 = vpop.xlane.xlu2 %1289 }
 0x3cc   : > { %v1294_v31 = vsub.f32 %v1262_v54, %v1290_v30 }
 0x3ce   : > { %v1296_v32 = vmul.f32 1.442695, %v1294_v31 }
 0x3d0   : > { %3429 = vpow2.f32 %v1296_v32 }
 0x3d3   : > { %v1433_v56 = vpop.permute.xlu2 %1432 }
 0x3d4   : > { %v1438_v8 = vsel %vm1200_vm8, %v1433_v56, 0 }
 0x3d6   : > { %v4465_v33 = vpop.eup %3429 }
 0x3d7   : > { %v1300_v34 = vsel %vm1172_vm9, %v4465_v33, 0.0 }
 0x3d8   : > { %1301 = vadd.xlane.f32.xlu0 %v1300_v34 }
 0x3db   : > { %v1410_v35 = vpop.xlane.xlu0 %1409 }
 0x3dc   : > { %v1414_v36 = vsub.f32 %v1384_v58, %v1410_v35 }
 0x3de   : > { %v1416_v37 = vmul.f32 1.442695, %v1414_v36 }
 0x3e0   : > { %3431 = vpow2.f32 %v1416_v37 }
 0x3e6   : > { %v4469_v38 = vpop.eup %3431 }
 0x3e7   : > { %v1420_v39 = vsel %vm1172_vm9, %v4469_v38, 0.0 }
 0x3e8   : > { %1421 = vadd.xlane.f32.xlu2 %v1420_v39 }
 0x3eb   : > { %v1293_v40 = vpop.xlane.xlu1 %1292 }
 0x3ec   : > { %v1295_v41 = vsub.f32 %v1285_v1, %v1293_v40  ;;  %1453 = vrot.lane.b32.xlu0 %v4455_v24, %s3937_s0 }
 0x3ee   : > { %v1298_v42 = vmul.f32 1.442695, %v1295_v41 }
 0x3f0   : > { %3433 = vpow2.f32 %v1298_v42  ;;  %v1187_v43 = vpop.xlane.xlu0 %1186 }
 0x3f1   : > { %3435 = vrcp.f32 %v1187_v43 }
 0x3f3   : > { %v1524_v44 = vpop.xlane.xlu1 %1523 }
 0x3f4   : > { %v1528_v45 = vsub.f32 %v1498_v7, %v1524_v44 }
 0x3f6   : > { %v3434_v46 = vpop.eup %3433  ;;  %v1530_v47 = vmul.f32 1.442695, %v1528_v45 }
 0x3f7   : > { %v3436_v48 = vpop.eup %3435  ;;  %v1303_v49 = vsel %vm1172_vm9, %v3434_v46, 0.0 }
 0x3f8   : > { %v1193_v50 = vmul.f32 %v3436_v48, %v3426_v6  ;;  %3437 = vpow2.f32 %v1530_v47  ;;  %1304 = vadd.xlane.f32.xlu2 %v1303_v49 }
 0x3fa   : > { %v1195_v51 = vpack.c.bf16 %v1193_v50, %v1193_v50 }
 0x3fc   : > { %2852 = vmatmul.msk.bf16.vlgmr.msra.gmra.mxu3 %vm1172_vm9, %v1195_v51 }
 0x3fe   : > { %v4477_v52 = vpop.eup %3437 }
 0x3ff   : > { %v1534_v53 = vsel %vm1172_vm9, %v4477_v52, 0.0 }
 0x400   : > { %1535 = vadd.xlane.f32.xlu1 %v1534_v53  ;;  %v1190_v54 = vpop.xlane.xlu1 %1189 }
 0x401   : > { %3439 = vrcp.f32 %v1190_v54 }
 0x403   : > { %v1340_v55 = vpop.permute.xlu0 %1339 }
 0x404   : > { %v1345_v57 = vsel %vm1200_vm8, %v1340_v55, 0 }
 0x405   : > { %1354 = vmatpush.bf16.msra.mxu0 %v1345_v57 }
 0x407   : > { %v3440_v58 = vpop.eup %3439 }
 0x408   : > { %v1194_v59 = vmul.f32 %v3440_v58, %v3428_v20 }
 0x40a   : > { %v1196_v60 = vpack.c.bf16 %v1194_v59, %v1194_v59 }
 0x40c   : > { %v1413_v13 = vpop.xlane.xlu2 %1412  ;;  %2853 = vmatmul.msk.bf16.vlgmr.msrb.gmra.mxu0 %vm1172_vm9, %v1196_v60 }
 0x40d   : > { %v1415_v62 = vsub.f32 %v1405_v25, %v1413_v13 }
 0x40f   : > { %v1418_v63 = vmul.f32 1.442695, %v1415_v62  ;;  %v3194_v62 = vld [vmem:[%s4307_s18 + $0x38] sm:$0xff] }
 0x410   : > { %1689 = vmatpush.bf16.msrb.mxu1 %v3194_v62  ;;  %v2980_v62 = vld [vmem:[%s4312_s5 + $0xa0] sm:$0xf] }
 0x411   : > { %3441 = vpow2.f32 %v1418_v63  ;;  %v3193_v63 = vld [vmem:[%s4307_s18 + $0x30] sm:$0xff] }
 0x414   : > { %v1527_v17 = vpop.xlane.xlu2 %1526  ;;  %1690 = vmatpush.bf16.msrb.mxu1 %v3193_v63  ;;  %v3217_v63 = vld [vmem:[%s4312_s5 + $0xac] sm:$0xf0] }
 0x415   : > { %v1529_v0 = vsub.f32 %v1519_v28, %v1527_v17  ;;  %v3192_v17 = vld [vmem:[%s4307_s18 + $0x28] sm:$0xff] }
 0x417   : > { %v3442_v1 = vpop.eup %3441  ;;  %v1532_v4 = vmul.f32 1.442695, %v1529_v0  ;;  %v3191_v0 = vld [vmem:[%s4307_s18 + $0x20] sm:$0xff] }
 0x418   : > { %v1316_v5 = vpop.permute.xlu1 %1315  ;;  %v1423_v6 = vsel %vm1172_vm9, %v3442_v1, 0.0  ;;  %1691 = vmatpush.bf16.msrb.mxu1 %v3192_v17  ;;  %v3215_v17 = vld [vmem:[%s4312_s5 + $0xa4] sm:$0xf] }
 0x419   : > { %3443 = vpow2.f32 %v1532_v4  ;;  %v1321_v7 = vsel %vm1200_vm8, %v1316_v5, 0  ;;  %1424 = vadd.xlane.f32.xlu2 %v1423_v6  ;;  %v3189_v4 = vld [vmem:[%s4307_s18 + $0x10] sm:$0xff]  ;;  %v3188_v5 = vld [vmem:[%s4307_s18 + $0x8] sm:$0xff]  ;;  %v3187_v6 = vld [vmem:[%s4307_s18] sm:$0xff] }
 0x41a   : > { %1330 = vmatpush.bf16.msrb.mxu3 %v1321_v7 }
 0x41c   : > { %1692 = vmatpush.bf16.msrb.mxu1 %v3191_v0  ;;  %v2981_v0 = vor.u32 %v3217_v63, %v2980_v62  ;;  %v2926_v62 = vld [vmem:[%s4312_s5 + $0x38] sm:$0xf0]  ;;  %v2900_v63 = vld [vmem:[%s4312_s5] sm:$0xf] }
 0x41e   : > { %1447 = vmatpush.bf16.msra.mxu3 %v1438_v8 }
 0x41f   : > { %v3444_v9 = vpop.eup %3443 }
 0x420   : > { %v1537_v11 = vsel %vm1172_vm9, %v3444_v9, 0.0 }
 0x421   : > { %1538 = vadd.xlane.f32.xlu0 %v1537_v11 }
 0x431   : > { %1546 = vrot.lane.b32.xlu2 %v4444_v61, %s3938_s24 }
 0x439   : > { %1567 = vrot.lane.b32.xlu2 %v4455_v24, %s3938_s24 }
 0x44b   : > { %v1302_v12 = vpop.xlane.xlu0 %1301 }
 0x44c   : > { %3445 = vrcp.f32 %v1302_v12 }
 0x452   : > { %v3446_v14 = vpop.eup %3445 }
 0x453   : > { %v1308_v15 = vmul.f32 %v3446_v14, %v4465_v33 }
 0x455   : > { %v1310_v16 = vpack.c.bf16 %v1308_v15, %v1308_v15 }
 0x457   : > { %2856 = vmatmul.msk.bf16.vlgmr.msrb.gmra.mxu3 %vm1172_vm9, %v1310_v16 }
 0x45b   : > { %v1422_v19 = vpop.xlane.xlu2 %1421 }
 0x45c   : > { %3447 = vrcp.f32 %v1422_v19 }
 0x45e   : > { %v1454_v20 = vpop.permute.xlu0 %1453 }
 0x45f   : > { %v1459_v21 = vsel %vm1200_vm8, %v1454_v20, 0 }
 0x460   : > { %1468 = vmatpush.bf16.msrb.mxu0 %v1459_v21 }
 0x462   : > { %v3448_v22 = vpop.eup %3447 }
 0x463   : > { %v1428_v61 = vmul.f32 %v3448_v22, %v4469_v38 }
 0x465   : > { %v1430_v23 = vpack.c.bf16 %v1428_v61, %v1428_v61 }
 0x467   : > { %2860 = vmatmul.msk.bf16.vlgmr.msra.gmra.mxu3 %vm1172_vm9, %v1430_v23 }
 0x46b   : > { %v1305_v24 = vpop.xlane.xlu2 %1304 }
 0x46c   : > { %3449 = vrcp.f32 %v1305_v24 }
 0x472   : > { %v3450_v25 = vpop.eup %3449 }
 0x473   : > { %v1309_v26 = vmul.f32 %v3450_v25, %v3434_v46  ;;  %v1536_v29 = vpop.xlane.xlu1 %1535 }
 0x474   : > { %3451 = vrcp.f32 %v1536_v29 }
 0x475   : > { %v1311_v27 = vpack.c.bf16 %v1309_v26, %v1309_v26  ;;  %v3415_v26 = vld [vmem:[%s719_s17] ss:$0 sm:$0xff] }
 0x477   : > { %2857 = vmatmul.msk.bf16.vlgmr.msra.gmra.mxu0 %vm1172_vm9, %v1311_v27 }
 0x47a   : > { %v3452_v32 = vpop.eup %3451 }
 0x47b   : > { %v1542_v35 = vmul.f32 %v3452_v32, %v4477_v52 }
 0x47d   : > { %v1544_v41 = vpack.c.bf16 %v1542_v35, %v1542_v35 }
 0x47f   : > { %v4497_v28 = vpop.f32.mrf.mxu3 }
 0x487   : > { %v1215_v18 = vpop.f32.mrf.mxu3 }
 0x489   : > { %v4499_v30 = vpop.f32.mrf.mxu0 }
 0x48c   : > { %v1425_v31 = vpop.xlane.xlu2 %1424 }
 0x48d   : > { %3453 = vrcp.f32 %v1425_v31 }
 0x491   : > { %v1234_v33 = vpop.f32.mrf.mxu0 }
 0x493   : > { %v3454_v34 = vpop.eup %3453 }
 0x494   : > { %v1429_v36 = vmul.f32 %v3454_v34, %v3442_v1  ;;  %v1547_v37 = vpop.permute.xlu2 %1546  ;;  %v1539_v40 = vpop.xlane.xlu0 %1538  ;;  %v3190_v1 = vld [vmem:[%s4307_s18 + $0x18] sm:$0xff] }
 0x495   : > { %v1552_v38 = vsel %vm1200_vm8, %v1547_v37, 0  ;;  %3455 = vrcp.f32 %v1539_v40  ;;  %1693 = vmatpush.bf16.msrb.mxu1 %v3190_v1  ;;  %v3223_v40 = vld [vmem:[%s4312_s5 + $0xe4] sm:$0xf]  ;;  %v2982_v1 = vld [vmem:[%s4312_s5 + $0xb0] sm:$0xf0] }
 0x496   : > { %v1431_v39 = vpack.c.bf16 %v1429_v36, %v1429_v36  ;;  %1561 = vmatpush.bf16.msrb.mxu3 %v1552_v38  ;;  %v3012_v38 = vld [vmem:[%s4312_s5 + $0xe0] sm:$0xf] }
 0x498   : > { %2861 = vmatmul.msk.bf16.vlgmr.msrb.gmra.mxu0 %vm1172_vm9, %v1431_v39  ;;  %v3225_v39 = vld [vmem:[%s4312_s5 + $0xec] sm:$0xf0] }
 0x499   : > { %2864 = vmatmul.msk.bf16.vlgmr.msrb.gmra.mxu3 %vm1172_vm9, %v1544_v41  ;;  %1694 = vmatpush.bf16.msrb.mxu1 %v3189_v4  ;;  %v3013_v41 = vor.u32 %v3225_v39, %v3012_v38  ;;  %v2988_v4 = vld [vmem:[%s4312_s5 + $0xa8] sm:$0xf]  ;;  %v2932_v39 = vld [vmem:[%s4312_s5 + $0x40] sm:$0xf] }
 0x49b   : > { %v3456_v44 = vpop.eup %3455  ;;  %1960 = vmatpush.bf16.msrb.mxu2 %v3013_v41  ;;  %v3203_v41 = vld [vmem:[%s4312_s5 + $0x44] sm:$0xf] }
 0x49c   : > { %v1568_v42 = vpop.permute.xlu2 %1567  ;;  %v1543_v45 = vmul.f32 %v3456_v44, %v3444_v9  ;;  %v3226_v44 = vld [vmem:[%s4312_s5 + $0xf4] sm:$0xf0] }
 0x49d   : > { %v1573_v43 = vsel %vm1200_vm8, %v1568_v42, 0  ;;  %1695 = vmatpush.bf16.msrb.mxu1 %v3188_v5  ;;  %v3014_v42 = vld [vmem:[%s4312_s5 + $0xf0] sm:$0xf0]  ;;  %v3218_v5 = vld [vmem:[%s4312_s5 + $0xb4] sm:$0xf0] }
 0x49e   : > { %1582 = vmatpush.bf16.msra.mxu0 %v1573_v43  ;;  %v1545_v46 = vpack.c.bf16 %v1543_v45, %v1543_v45  ;;  %v3020_v43 = vld [vmem:[%s4312_s5 + $0xe8] sm:$0xf]  ;;  %v3017_v45 = vor.u32 %v3223_v40, %v3014_v42  ;;  %v3205_v40 = vld [vmem:[%s4312_s5 + $0x4c] sm:$0xf0] }
 0x49f   : > { %v2933_v42 = vor.u32 %v3205_v40, %v2932_v39  ;;  %v3417_v40 = vld [vmem:[%s737_s22] ss:$0 sm:$0xff] }
 0x4a0   : > { %1974 = vmatpush.bf16.msra.mxu3 %v3017_v45  ;;  %v3206_v45 = vld [vmem:[%s4312_s5 + $0x54] sm:$0xf0] }
 0x4a1   : > { %1696 = vmatpush.bf16.msrb.mxu1 %v3187_v6  ;;  %v2985_v6 = vor.u32 %v3215_v17, %v2982_v1  ;;  %v3197_v1 = vld [vmem:[%s4312_s5 + $0xc] sm:$0xf0] }
 0x4a8   : > { %2865 = vmatmul.msk.bf16.vlgmr.msra.gmra.mxu0 %vm1172_vm9, %v1545_v46  ;;  %v3021_v46 = vor.u32 %v3226_v44, %v3020_v43  ;;  %v2934_v43 = vld [vmem:[%s4312_s5 + $0x50] sm:$0xf0]  ;;  %v2940_v44 = vld [vmem:[%s4312_s5 + $0x48] sm:$0xf] }
 0x4aa   : > { %1988 = vmatpush.bf16.msrb.mxu0 %v3021_v46  ;;  %v2937_v46 = vor.u32 %v3203_v41, %v2934_v43 }
 0x4da   : > { %v1332_v47 = vpop.f32.mrf.mxu3 }
 0x4e2   : > { %v1334_v48 = vpop.f32.mrf.mxu3 }
 0x4e3   : > { %v3022_v48 = vld [vmem:[%s4312_s5 + $0xf8] sm:$0xf0] }
 0x4ea   : > { %v1449_v49 = vpop.f32.mrf.mxu3 }
 0x4f2   : > { %v1451_v50 = vpop.f32.mrf.mxu3 }
 0x4f3   : > { %v2996_v50 = vld [vmem:[%s4312_s5 + $0xc0] sm:$0xf] }
 0x4f4   : > { %v1356_v51 = vpop.f32.mrf.mxu0 }
 0x4f5   : > { %v3398_v52 = vpack.i.bf16 %v1356_v51, %v1332_v47  ;;  %v3224_v47 = vld [vmem:[%s4312_s5 + $0xec] sm:$0xf]  ;;  %v3221_v51 = vld [vmem:[%s4312_s5 + $0xcc] sm:$0xf0] }
 0x4f7   : > { %3399 = vrot.lane.b32.xlu2 %v3398_v52, %s3938_s24  ;;  %v3219_v52 = vld [vmem:[%s4312_s5 + $0xc4] sm:$0xf] }
 0x4fc   : > { %v1358_v53 = vpop.f32.mrf.mxu0 }
 0x4fd   : > { %v2997_v53 = vor.u32 %v3221_v51, %v2996_v50  ;;  %v2916_v51 = vld [vmem:[%s4312_s5 + $0x20] sm:$0xf] }
 0x4ff   : > { %1961 = vmatpush.bf16.msrb.mxu2 %v2997_v53  ;;  %v3199_v53 = vld [vmem:[%s4312_s5 + $0x24] sm:$0xf] }
 0x503   : > { %1962 = vmatpush.bf16.msrb.mxu2 %v2981_v0 }
 0x515   : > { %v1470_v54 = vpop.f32.mrf.mxu0 }
 0x516   : > { %v3403_v55 = vpack.i.bf16 %v1470_v54, %v1449_v49  ;;  %v3025_v49 = vor.u32 %v3224_v47, %v3022_v48  ;;  %v2998_v54 = vld [vmem:[%s4312_s5 + $0xd0] sm:$0xf0]  ;;  %v2941_v47 = vor.u32 %v3206_v45, %v2940_v44  ;;  %v3204_v48 = vld [vmem:[%s4312_s5 + $0x4c] sm:$0xf]  ;;  %v3250_v44 = vld [vmem:[%s4314_s13 + $0xb8] sm:$0xff] }
 0x517   : > { %v3258_v45 = vld [vmem:[%s4314_s13 + $0xf8] sm:$0xff] }
 0x518   : > { %3404 = vrot.lane.b32.xlu1 %v3403_v55, %s3937_s0  ;;  %2002 = vmatpush.bf16.msra.mxu1 %v3025_v49  ;;  %v3004_v55 = vld [vmem:[%s4312_s5 + $0xc8] sm:$0xf]  ;;  %v2942_v49 = vld [vmem:[%s4312_s5 + $0x58] sm:$0xf0] }
 0x519   : > { %v2945_v50 = vor.u32 %v3204_v48, %v2942_v49  ;;  %v3242_v48 = vld [vmem:[%s4314_s13 + $0x78] sm:$0xff]  ;;  %v3248_v49 = vld [vmem:[%s4314_s13 + $0xa8] sm:$0xff] }
 0x51c   : > { %v1563_v56 = vpop.f32.mrf.mxu3 }
 0x51d   : > { %v1472_v57 = vpop.f32.mrf.mxu0 }
 0x51e   : > { %v3001_v57 = vor.u32 %v3219_v52, %v2998_v54  ;;  %v3201_v52 = vld [vmem:[%s4312_s5 + $0x2c] sm:$0xf0] }
 0x51f   : > { %v2917_v54 = vor.u32 %v3201_v52, %v2916_v51  ;;  %v3233_v51 = vld [vmem:[%s4314_s13 + $0x30] sm:$0xff] }
 0x520   : > { %1975 = vmatpush.bf16.msra.mxu3 %v3001_v57  ;;  %v3202_v57 = vld [vmem:[%s4312_s5 + $0x34] sm:$0xf0]  ;;  %v3241_v52 = vld [vmem:[%s4314_s13 + $0x70] sm:$0xff] }
 0x524   : > { %v1565_v58 = vpop.f32.mrf.mxu3  ;;  %1976 = vmatpush.bf16.msra.mxu3 %v2985_v6  ;;  %v2901_v6 = vor.u32 %v3197_v1, %v2900_v63  ;;  %v3230_v63 = vld [vmem:[%s4314_s13 + $0x18] sm:$0xff]  ;;  %v3252_v1 = vld [vmem:[%s4314_s13 + $0xc8] sm:$0xff] }
 0x525   : > { %v1584_v59 = vpop.f32.mrf.mxu0 }
 0x526   : > { %v3408_v60 = vpack.i.bf16 %v1584_v59, %v1563_v56  ;;  %v3222_v56 = vld [vmem:[%s4312_s5 + $0xd4] sm:$0xf0]  ;;  %v3220_v59 = vld [vmem:[%s4312_s5 + $0xcc] sm:$0xf] }
 0x527   : > { %v3005_v58 = vor.u32 %v3222_v56, %v3004_v55  ;;  %v2918_v55 = vld [vmem:[%s4312_s5 + $0x30] sm:$0xf0]  ;;  %v2924_v56 = vld [vmem:[%s4312_s5 + $0x28] sm:$0xf] }
 0x528   : > { %3409 = vrot.lane.b32.xlu2 %v3408_v60, %s3936_s21  ;;  %v3006_v60 = vld [vmem:[%s4312_s5 + $0xd8] sm:$0xf0] }
 0x529   : > { %1989 = vmatpush.bf16.msrb.mxu0 %v3005_v58 }
 0x52d   : > { %v1586_v13 = vpop.f32.mrf.mxu0 }
 0x52e   : > { %v3009_v13 = vor.u32 %v3220_v59, %v3006_v60  ;;  %v2921_v59 = vor.u32 %v3199_v53, %v2918_v55  ;;  %v2925_v60 = vor.u32 %v3202_v57, %v2924_v56  ;;  %v3247_v53 = vld [vmem:[%s4314_s13 + $0xa0] sm:$0xff]  ;;  %v3232_v55 = vld [vmem:[%s4314_s13 + $0x28] sm:$0xff]  ;;  %v3246_v57 = vld [vmem:[%s4314_s13 + $0x98] sm:$0xff] }
 0x52f   : > { %v3240_v56 = vld [vmem:[%s4314_s13 + $0x68] sm:$0xff] }
 0x530   : > { %2003 = vmatpush.bf16.msra.mxu1 %v3009_v13  ;;  %v3200_v13 = vld [vmem:[%s4312_s5 + $0x2c] sm:$0xf] }
 0x531   : > { %v2929_v0 = vor.u32 %v3200_v13, %v2926_v62  ;;  %v3245_v13 = vld [vmem:[%s4314_s13 + $0x90] sm:$0xff] }
 0x532   : > { %v3253_v62 = vld [vmem:[%s4314_s13 + $0xd0] sm:$0xff] }
 0x551   : > { %v3400_v7 = vpop.permute.xlu2 %3399 }
 0x552   : > { %v3402_v8 = vunpack.i.h.bf16 %v3400_v7  ;;  %v3401_v9 = vunpack.i.l.bf16 %v3400_v7  ;;  %v2989_v7 = vor.u32 %v3218_v5, %v2988_v4  ;;  %v3195_v4 = vld [vmem:[%s4312_s5 + $0x4] sm:$0xf]  ;;  %v2902_v5 = vld [vmem:[%s4312_s5 + $0x10] sm:$0xf0] }
 0x554   : > { %v1613_v16 = vsel %vm1133_vm7, %v4499_v30, %v3402_v8  ;;  %v1612_v19 = vsel %vm1133_vm7, %v4497_v28, %v3401_v9  ;;  %v3216_v8 = vld [vmem:[%s4312_s5 + $0xac] sm:$0xf]  ;;  %v2990_v9 = vld [vmem:[%s4312_s5 + $0xb8] sm:$0xf0]  ;;  %1990 = vmatpush.bf16.msrb.mxu0 %v2989_v7  ;;  %v2905_v7 = vor.u32 %v3195_v4, %v2902_v5  ;;  %v3229_v5 = vld [vmem:[%s4314_s13 + $0x10] sm:$0xff] }
 0x555   : > { %v4641_v4 = vld [vmem:[%s4299_s25] sm:$0xf] }
 0x582   : > { %v3410_v11 = vpop.permute.xlu2 %3409 }
 0x583   : > { %v3412_v20 = vunpack.i.h.bf16 %v3410_v11  ;;  %v3411_v21 = vunpack.i.l.bf16 %v3410_v11  ;;  %v2993_v11 = vor.u32 %v3216_v8, %v2990_v9  ;;  %v2908_v8 = vld [vmem:[%s4312_s5 + $0x8] sm:$0xf]  ;;  %v3198_v9 = vld [vmem:[%s4312_s5 + $0x14] sm:$0xf0] }
 0x585   : > { %2004 = vmatpush.bf16.msra.mxu1 %v2993_v11  ;;  %v3196_v11 = vld [vmem:[%s4312_s5 + $0xc] sm:$0xf] }
 0x58a   : > { %v3405_v12 = vpop.permute.xlu1 %3404 }
 0x58b   : > { %v3407_v14 = vunpack.i.h.bf16 %v3405_v12  ;;  %v3406_v15 = vunpack.i.l.bf16 %v3405_v12  ;;  %v2964_v12 = vld [vmem:[%s4312_s5 + $0x80] sm:$0xf] }
 0x58d   : > { %v1616_v22 = vsel %vm1614_vm10, %v1613_v16, %v3407_v14  ;;  %v1615_v61 = vsel %vm1614_vm10, %v1612_v19, %v3406_v15  ;;  %v3213_v14 = vld [vmem:[%s4312_s5 + $0x8c] sm:$0xf0]  ;;  %v3211_v15 = vld [vmem:[%s4312_s5 + $0x84] sm:$0xf]  ;;  %v2966_v19 = vld [vmem:[%s4312_s5 + $0x90] sm:$0xf0] }
 0x58e   : > { %v1618_v23 = vsel %vm1617_vm11, %v1615_v61, %v3411_v21  ;;  %v1619_v24 = vsel %vm1617_vm11, %v1616_v22, %v3412_v20  ;;  %v2965_v16 = vor.u32 %v3213_v14, %v2964_v12  ;;  %v2972_v20 = vld [vmem:[%s4312_s5 + $0x88] sm:$0xf]  ;;  %v3214_v21 = vld [vmem:[%s4312_s5 + $0x94] sm:$0xf0]  ;;  %v2969_v22 = vor.u32 %v3211_v15, %v2966_v19  ;;  %v2910_v15 = vld [vmem:[%s4312_s5 + $0x18] sm:$0xf0] }
 0x58f   : > { %v1620_v25 = vpack.c.bf16 %v1619_v24, %v1618_v23  ;;  %v2973_v61 = vor.u32 %v3214_v21, %v2972_v20  ;;  %v3212_v23 = vld [vmem:[%s4312_s5 + $0x8c] sm:$0xf]  ;;  %v2974_v24 = vld [vmem:[%s4312_s5 + $0x98] sm:$0xf0]  ;;  %v2909_v14 = vor.u32 %v3198_v9, %v2908_v8  ;;  %v3251_v8 = vld [vmem:[%s4314_s13 + $0xc0] sm:$0xff]  ;;  %v1794_v9 = vperm.slane %v4641_v4, 2 }
 0x590   : > { %1963 = vmatpush.bf16.msrb.mxu2 %v2965_v16  ;;  %1977 = vmatpush.bf16.msra.mxu3 %v2969_v22  ;;  %v2913_v16 = vor.u32 %v3196_v11, %v2910_v15  ;;  %v1795_v11 = vperm.slane %v4641_v4, 3 }
 0x591   : > { %1697 = vmatmul.bf16.vlgmr.msrb.gmra.mxu1 %v1620_v25  ;;  %v2977_v25 = vor.u32 %v3212_v23, %v2974_v24  ;;  %1991 = vmatpush.bf16.msrb.mxu0 %v2973_v61 }
 0x593   : > { %2005 = vmatpush.bf16.msra.mxu1 %v2977_v25 }
 0x60e   : > { %v1698_v27 = vpop.f32.mrf.mxu1 }
 0x60f   : > { %v1699_v29 = vadd.f32 %v3415_v26, %v1698_v27  ;;  %v3209_v27 = vld [vmem:[%s4312_s5 + $0x6c] sm:$0xf0] }
 0x611   : > { %v4525_v18 = vadd.f32 %v1699_v29, %v4318_v2  ;;  %v3207_v29 = vld [vmem:[%s4312_s5 + $0x64] sm:$0xf] }
 0x613   : > { %1707 = vadd.xlane.f32.xlu0 %v4525_v18 }
 0x616   : > { %v1700_v28 = vpop.f32.mrf.mxu1 }
 0x617   : > { %v1701_v30 = vadd.f32 %v3415_v26, %v1700_v28  ;;  %v2948_v26 = vld [vmem:[%s4312_s5 + $0x60] sm:$0xf] }
 0x618   : > { %v2949_v28 = vor.u32 %v3209_v27, %v2948_v26 }
 0x619   : > { %v4529_v31 = vadd.f32 %v1701_v30, %v4321_v3  ;;  %v2950_v30 = vld [vmem:[%s4312_s5 + $0x70] sm:$0xf0] }
 0x61a   : > { %1964 = vmatpush.bf16.msrb.mxu2 %v2949_v28 }
 0x61b   : > { %1709 = vadd.xlane.f32.xlu2 %v4529_v31 }
 0x61e   : > { %1965 = vmatpush.bf16.msrb.mxu2 %v2933_v42 }
 0x622   : > { %1966 = vmatpush.bf16.msrb.mxu2 %v2917_v54  ;;  %v3255_v54 = vld [vmem:[%s4314_s13 + $0xe0] sm:$0xff] }
 0x626   : > { %1967 = vmatpush.bf16.msrb.mxu2 %v2901_v6  ;;  %v3237_v6 = vld [vmem:[%s4314_s13 + $0x50] sm:$0xff] }
 0x686   : > { %v1708_v32 = vpop.xlane.xlu0 %1707 }
 0x687   : > { %v1711_v33 = vmul.f32 %v1708_v32, %v4324_v10  ;;  %v2956_v32 = vld [vmem:[%s4312_s5 + $0x68] sm:$0xf] }
 0x689   : > { %v4534_v2 = vsub.f32 %v4525_v18, %v1711_v33  ;;  %v3210_v33 = vld [vmem:[%s4312_s5 + $0x74] sm:$0xf0] }
 0x68b   : > { %v1715_v34 = vmul.f32 %v4534_v2, %v4534_v2 }
 0x68d   : > { %1717 = vadd.xlane.f32.xlu0 %v1715_v34  ;;  %v2953_v34 = vor.u32 %v3207_v29, %v2950_v30 }
 0x68e   : > { %v1710_v35 = vpop.xlane.xlu2 %1709 }
 0x68f   : > { %v1712_v3 = vmul.f32 %v1710_v35, %v4324_v10  ;;  %v2957_v35 = vor.u32 %v3210_v33, %v2956_v32  ;;  %1978 = vmatpush.bf16.msra.mxu3 %v2953_v34 }
 0x691   : > { %v4540_v36 = vsub.f32 %v4529_v31, %v1712_v3  ;;  %v3208_v3 = vld [vmem:[%s4312_s5 + $0x6c] sm:$0xf]  ;;  %1992 = vmatpush.bf16.msrb.mxu0 %v2957_v35  ;;  %v3416_v35 = vld [vmem:[%s728_s2] ss:$0 sm:$0xff] }
 0x693   : > { %v1716_v37 = vmul.f32 %v4540_v36, %v4540_v36  ;;  %1979 = vmatpush.bf16.msra.mxu3 %v2937_v46  ;;  %v3257_v46 = vld [vmem:[%s4314_s13 + $0xf0] sm:$0xff] }
 0x695   : > { %1719 = vadd.xlane.f32.xlu0 %v1716_v37  ;;  %v2958_v37 = vld [vmem:[%s4312_s5 + $0x78] sm:$0xf0]  ;;  %1993 = vmatpush.bf16.msrb.mxu0 %v2941_v47 }
 0x696   : > { %v2961_v38 = vor.u32 %v3208_v3, %v2958_v37  ;;  %v3234_v47 = vld [vmem:[%s4314_s13 + $0x38] sm:$0xff] }
 0x697   : > { %1980 = vmatpush.bf16.msra.mxu3 %v2921_v59  ;;  %2352 = vmatpush.bf16.msra.mxu2 %v3234_v47  ;;  %v3231_v59 = vld [vmem:[%s4314_s13 + $0x20] sm:$0xff] }
 0x698   : > { %2006 = vmatpush.bf16.msra.mxu1 %v2961_v38 }
 0x699   : > { %1994 = vmatpush.bf16.msrb.mxu0 %v2925_v60  ;;  %v3239_v60 = vld [vmem:[%s4314_s13 + $0x60] sm:$0xff] }
 0x69b   : > { %1981 = vmatpush.bf16.msra.mxu3 %v2905_v7  ;;  %2353 = vmatpush.bf16.msra.mxu2 %v3233_v51  ;;  %v3243_v7 = vld [vmem:[%s4314_s13 + $0x80] sm:$0xff] }
 0x69c   : > { %2007 = vmatpush.bf16.msra.mxu1 %v2945_v50  ;;  %v3256_v50 = vld [vmem:[%s4314_s13 + $0xe8] sm:$0xff] }
 0x69d   : > { %1995 = vmatpush.bf16.msrb.mxu0 %v2909_v14  ;;  %v3236_v14 = vld [vmem:[%s4314_s13 + $0x48] sm:$0xff] }
 0x69f   : > { %2366 = vmatpush.bf16.msrb.mxu3 %v3242_v48  ;;  %2354 = vmatpush.bf16.msra.mxu2 %v3232_v55 }
 0x6a0   : > { %2008 = vmatpush.bf16.msra.mxu1 %v2929_v0  ;;  %v3244_v0 = vld [vmem:[%s4314_s13 + $0x88] sm:$0xff] }
 0x6a1   : > { %2380 = vmatpush.bf16.msra.mxu0 %v3250_v44 }
 0x6a3   : > { %2367 = vmatpush.bf16.msrb.mxu3 %v3241_v52  ;;  %2355 = vmatpush.bf16.msra.mxu2 %v3231_v59 }
 0x6a4   : > { %2009 = vmatpush.bf16.msra.mxu1 %v2913_v16 }
 0x6a7   : > { %2368 = vmatpush.bf16.msrb.mxu3 %v3240_v56  ;;  %2356 = vmatpush.bf16.msra.mxu2 %v3230_v63 }
 0x6a8   : > { %2394 = vmatpush.bf16.msrb.mxu1 %v3258_v45 }
 0x6ab   : > { %2369 = vmatpush.bf16.msrb.mxu3 %v3239_v60  ;;  %2357 = vmatpush.bf16.msra.mxu2 %v3229_v5 }
 0x6ac   : > { %2395 = vmatpush.bf16.msrb.mxu1 %v3257_v46 }
 0x6b0   : > { %2396 = vmatpush.bf16.msrb.mxu1 %v3256_v50 }
 0x6b4   : > { %2397 = vmatpush.bf16.msrb.mxu1 %v3255_v54 }
 0x700   : > { %v1718_v58 = vpop.xlane.xlu0 %1717 }
 0x701   : > { %v1721_v17 = vmul.f32 %v1718_v58, %v4324_v10  ;;  %v3254_v58 = vld [vmem:[%s4314_s13 + $0xd8] sm:$0xff] }
 0x702   : > { %2398 = vmatpush.bf16.msrb.mxu1 %v3254_v58 }
 0x703   : > { %v1723_v12 = vadd.f32 1e-05, %v1721_v17  ;;  %v3238_v17 = vld [vmem:[%s4314_s13 + $0x58] sm:$0xff] }
 0x704   : > { %2370 = vmatpush.bf16.msrb.mxu3 %v3238_v17 }
 0x705   : > { %3457 = vrsqrt.f32 %v1723_v12  ;;  %vm1731_vm13 = vweird.f32 %v1723_v12 }
 0x706   : > { %2399 = vmatpush.bf16.msrb.mxu1 %v3253_v62 }
 0x708   : > { %v1720_v19 = vpop.xlane.xlu0 %1719  ;;  %2371 = vmatpush.bf16.msrb.mxu3 %v3237_v6 }
 0x709   : > { %v1722_v20 = vmul.f32 %v1720_v19, %v4324_v10 }
 0x70a   : > { %2400 = vmatpush.bf16.msrb.mxu1 %v3252_v1 }
 0x70b   : > { %v3458_v21 = vpop.eup %3457  ;;  %v1724_v22 = vadd.f32 1e-05, %v1722_v20 }
 0x70c   : > { %v1726_v61 = vmul.f32 %v3458_v21, %v1723_v12  ;;  %vm1732_vm12 = vweird.f32 %v3458_v21  ;;  %v3228_v12 = vld [vmem:[%s4314_s13 + $0x8] sm:$0xff]  ;;  %2372 = vmatpush.bf16.msrb.mxu3 %v3236_v14 }
 0x70d   : > { %3459 = vrsqrt.f32 %v1724_v22  ;;  %vm1733_vm14 = vmor %vm1731_vm13, %vm1732_vm12  ;;  %vm1741_vm0 = vweird.f32 %v1724_v22  ;;  %2358 = vmatpush.bf16.msra.mxu2 %v3228_v12 }
 0x70e   : > { %v1727_v23 = vmul.f32 %v3458_v21, %v1726_v61  ;;  %2401 = vmatpush.bf16.msrb.mxu1 %v3251_v8 }
 0x710   : > { %v1728_v24 = vmul.f32 0.5, %v1727_v23 }
 0x712   : > { %v1729_v25 = vsub.f32 1.5, %v1728_v24  ;;  %v3227_v24 = vld [vmem:[%s4314_s13] sm:$0xff] }
 0x713   : > { %v3460_v26 = vpop.eup %3459  ;;  %2359 = vmatpush.bf16.msra.mxu2 %v3227_v24 }
 0x714   : > { %v1730_v27 = vmul.f32 %v3458_v21, %v1729_v25  ;;  %v1736_v29 = vmul.f32 %v3460_v26, %v1724_v22  ;;  %vm1742_vm15 = vweird.f32 %v3460_v26  ;;  %v1793_v22 = vperm.slane %v4641_v4, 1  ;;  %v3235_v25 = vld [vmem:[%s4314_s13 + $0x40] sm:$0xff] }
 0x715   : > { %vm1743_vm1 = vmor %vm1741_vm0, %vm1742_vm15  ;;  %2373 = vmatpush.bf16.msrb.mxu3 %v3235_v25 }
 0x716   : > { %v1737_v28 = vmul.f32 %v3460_v26, %v1736_v29  ;;  %v1734_v30 = vsel %vm1733_vm14, %v3458_v21, %v1730_v27  ;;  %v1792_v21 = vperm.slane %v4641_v4, 0 }
 0x717   : > { %v1745_v34 = vmul.f32 %v1734_v30, %v4534_v2 }
 0x718   : > { %v1738_v32 = vmul.f32 0.5, %v1737_v28 }
 0x719   : > { %v1750_v39 = vmul.f32 %v3416_v35, %v1745_v34 }
 0x71a   : > { %v1739_v33 = vsub.f32 1.5, %v1738_v32 }
 0x71b   : > { %v1755_v42 = vadd.f32 %v3417_v40, %v1750_v39 }
 0x71c   : > { %v1740_v3 = vmul.f32 %v3460_v26, %v1739_v33 }
 0x71e   : > { %v1744_v37 = vsel %vm1743_vm1, %v3460_v26, %v1740_v3 }
 0x71f   : > { %v1746_v38 = vmul.f32 %v1744_v37, %v4540_v36  ;;  %v3249_v36 = vld [vmem:[%s4314_s13 + $0xb0] sm:$0xff] }
 0x720   : > { %2381 = vmatpush.bf16.msra.mxu0 %v3249_v36 }
 0x721   : > { %v1751_v41 = vmul.f32 %v3416_v35, %v1746_v38 }
 0x723   : > { %v1756_v2 = vadd.f32 %v3417_v40, %v1751_v41 }
 0x724   : > { %2382 = vmatpush.bf16.msra.mxu0 %v3248_v49 }
 0x725   : > { %v1757_v43 = vpack.c.bf16 %v1756_v2, %v1755_v42 }
 0x727   : > { %1968 = vmatmul.bf16.vlgmr.msrb.gmra.mxu2 %v1757_v43  ;;  %1982 = vmatmul.bf16.vlgmr.msra.gmra.mxu3 %v1757_v43 }
 0x728   : > { %1996 = vmatmul.bf16.vlgmr.msrb.gmra.mxu0 %v1757_v43  ;;  %2010 = vmatmul.bf16.vlgmr.msra.gmra.mxu1 %v1757_v43 }
 0x729   : > { %2383 = vmatpush.bf16.msra.mxu0 %v3247_v53 }
 0x72d   : > { %2384 = vmatpush.bf16.msra.mxu0 %v3246_v57 }
 0x731   : > { %2385 = vmatpush.bf16.msra.mxu0 %v3245_v13 }
 0x735   : > { %2386 = vmatpush.bf16.msra.mxu0 %v3244_v0 }
 0x739   : > { %2387 = vmatpush.bf16.msra.mxu0 %v3243_v7 }
 0x7a5   : > { %v1997_v15 = vpop.f32.mrf.mxu0  ;;  %v2011_v16 = vpop.f32.mrf.mxu1 }
 0x7a6   : > { %v4651_v19 = vadd.f32 %v1997_v15, %v1794_v9  ;;  %v4653_v20 = vadd.f32 %v2011_v16, %v1795_v11 }
 0x7a8   : > { %v2026_v61 = vmul.f32 0.044715, %v4651_v19  ;;  %v2027_v23 = vmul.f32 0.044715, %v4653_v20  ;;  %v2018_v24 = vmul.f32 0.5, %v4651_v19 }
 0x7aa   : > { %v2034_v26 = vmul.f32 %v2026_v61, %v4651_v19  ;;  %v2035_v27 = vmul.f32 %v2027_v23, %v4653_v20  ;;  %v1969_v29 = vpop.f32.mrf.mxu2  ;;  %v1983_v28 = vpop.f32.mrf.mxu3 }
 0x7ab   : > { %v4663_v30 = vadd.f32 %v1969_v29, %v1792_v21  ;;  %v4665_v32 = vadd.f32 %v1983_v28, %v1793_v22  ;;  %v2019_v29 = vmul.f32 0.5, %v4653_v20 }
 0x7ac   : > { %v2042_v33 = vmul.f32 %v2034_v26, %v4651_v19  ;;  %v2043_v34 = vmul.f32 %v2035_v27, %v4653_v20 }
 0x7ad   : > { %v2024_v35 = vmul.f32 0.044715, %v4663_v30  ;;  %v2025_v3 = vmul.f32 0.044715, %v4665_v32  ;;  %v1999_v37 = vpop.f32.mrf.mxu0  ;;  %v2013_v38 = vpop.f32.mrf.mxu1 }
 0x7ae   : > { %v2050_v39 = vadd.f32 %v2042_v33, %v4651_v19  ;;  %v2000_v40 = vadd.f32 %v1999_v37, %v1794_v9  ;;  %v2014_v41 = vadd.f32 %v2013_v38, %v1795_v11  ;;  %v2051_v42 = vadd.f32 %v2043_v34, %v4653_v20 }
 0x7af   : > { %v2032_v2 = vmul.f32 %v2024_v35, %v4663_v30  ;;  %v2033_v43 = vmul.f32 %v2025_v3, %v4665_v32  ;;  %v2017_v20 = vmul.f32 0.5, %v4665_v32 }
 0x7b0   : > { %v2030_v44 = vmul.f32 0.044715, %v2000_v40  ;;  %v2031_v46 = vmul.f32 0.044715, %v2014_v41  ;;  %v2058_v47 = vmul.f32 0.7978845, %v2050_v39 }
 0x7b1   : > { %v2040_v45 = vmul.f32 %v2032_v2, %v4663_v30  ;;  %v2041_v36 = vmul.f32 %v2033_v43, %v4665_v32  ;;  %v2059_v51 = vmul.f32 0.7978845, %v2051_v42  ;;  %v2022_v25 = vmul.f32 0.5, %v2000_v40 }
 0x7b2   : > { %v2038_v48 = vmul.f32 %v2030_v44, %v2000_v40  ;;  %v1971_v49 = vpop.f32.mrf.mxu2  ;;  %v1985_v50 = vpop.f32.mrf.mxu3  ;;  %v2039_v53 = vmul.f32 %v2031_v46, %v2014_v41  ;;  %3461 = vtanh.f32 %v2058_v47  ;;  %v2023_v28 = vmul.f32 0.5, %v2014_v41 }
 0x7b3   : > { %v2048_v52 = vadd.f32 %v2040_v45, %v4663_v30  ;;  %v1972_v54 = vadd.f32 %v1971_v49, %v1792_v21  ;;  %v2049_v55 = vadd.f32 %v2041_v36, %v4665_v32  ;;  %v1986_v57 = vadd.f32 %v1985_v50, %v1793_v22 }
 0x7b4   : > { %v2046_v56 = vmul.f32 %v2038_v48, %v2000_v40  ;;  %v2047_v59 = vmul.f32 %v2039_v53, %v2014_v41  ;;  %3463 = vtanh.f32 %v2059_v51  ;;  %v2016_v45 = vmul.f32 0.5, %v4663_v30  ;;  %v3418_v30 = vld [vmem:[%s850_s30] ss:$0 sm:$0xff] }
 0x7b5   : > { %v2056_v58 = vmul.f32 0.7978845, %v2048_v52  ;;  %v2028_v60 = vmul.f32 0.044715, %v1972_v54  ;;  %v2029_v62 = vmul.f32 0.044715, %v1986_v57 }
 0x7b6   : > { %v2054_v13 = vadd.f32 %v2046_v56, %v2000_v40  ;;  %v2055_v63 = vadd.f32 %v2047_v59, %v2014_v41  ;;  %v2057_v0 = vmul.f32 0.7978845, %v2049_v55  ;;  %v2020_v19 = vmul.f32 0.5, %v1972_v54 }
 0x7b7   : > { %v2036_v17 = vmul.f32 %v2028_v60, %v1972_v54  ;;  %v2037_v4 = vmul.f32 %v2029_v62, %v1986_v57  ;;  %3465 = vtanh.f32 %v2056_v58  ;;  %v2021_v41 = vmul.f32 0.5, %v1986_v57 }
 0x7b8   : > { %v2062_v1 = vmul.f32 0.7978845, %v2054_v13  ;;  %v2063_v5 = vmul.f32 0.7978845, %v2055_v63  ;;  %v3462_v9 = vpop.eup %3461 }
 0x7b9   : > { %v2044_v6 = vmul.f32 %v2036_v17, %v1972_v54  ;;  %v2045_v7 = vmul.f32 %v2037_v4, %v1986_v57  ;;  %v2074_v21 = vadd.f32 1.0, %v3462_v9 }
 0x7ba   : > { %3467 = vtanh.f32 %v2062_v1  ;;  %v3464_v12 = vpop.eup %3463 }
 0x7bb   : > { %v2052_v8 = vadd.f32 %v2044_v6, %v1972_v54  ;;  %3469 = vtanh.f32 %v2063_v5  ;;  %v2053_v11 = vadd.f32 %v2045_v7, %v1986_v57  ;;  %v2075_v61 = vadd.f32 1.0, %v3464_v12 }
 0x7bc   : > { %3471 = vtanh.f32 %v2057_v0  ;;  %v2082_v34 = vmul.f32 %v2074_v21, %v2018_v24 }
 0x7bd   : > { %v2060_v14 = vmul.f32 0.7978845, %v2052_v8  ;;  %v2061_v15 = vmul.f32 0.7978845, %v2053_v11  ;;  %v3466_v16 = vpop.eup %3465  ;;  %v2083_v3 = vmul.f32 %v2075_v61, %v2019_v29 }
 0x7be   : > { %v2072_v38 = vadd.f32 1.0, %v3466_v16 }
 0x7bf   : > { %3473 = vtanh.f32 %v2060_v14 }
 0x7c0   : > { %v3468_v22 = vpop.eup %3467  ;;  %3475 = vtanh.f32 %v2061_v15  ;;  %v2080_v46 = vmul.f32 %v2072_v38, %v2016_v45 }
 0x7c1   : > { %v3470_v23 = vpop.eup %3469  ;;  %v2078_v26 = vadd.f32 1.0, %v3468_v22 }
 0x7c2   : > { %v3472_v27 = vpop.eup %3471  ;;  %v2079_v33 = vadd.f32 1.0, %v3470_v23 }
 0x7c3   : > { %v2086_v35 = vmul.f32 %v2078_v26, %v2022_v25  ;;  %v2073_v2 = vadd.f32 1.0, %v3472_v27 }
 0x7c4   : > { %v2087_v37 = vmul.f32 %v2079_v33, %v2023_v28 }
 0x7c5   : > { %v3474_v39 = vpop.eup %3473  ;;  %v2090_v42 = vpack.c.bf16 %v2086_v35, %v2082_v34  ;;  %v2081_v48 = vmul.f32 %v2073_v2, %v2017_v20 }
 0x7c6   : > { %v3476_v43 = vpop.eup %3475  ;;  %v2091_v44 = vpack.c.bf16 %v2087_v37, %v2083_v3  ;;  %v2076_v40 = vadd.f32 1.0, %v3474_v39 }
 0x7c7   : > { %2388 = vmatmul.bf16.vlgmr.msra.gmra.mxu0 %v2090_v42  ;;  %v2077_v36 = vadd.f32 1.0, %v3476_v43 }
 0x7c8   : > { %2402 = vmatmul.bf16.vlgmr.msrb.gmra.mxu1 %v2091_v44  ;;  %v2084_v47 = vmul.f32 %v2076_v40, %v2020_v19 }
 0x7c9   : > { %v2085_v49 = vmul.f32 %v2077_v36, %v2021_v41 }
 0x7ca   : > { %v2088_v50 = vpack.c.bf16 %v2084_v47, %v2080_v46 }
 0x7cb   : > { %v2089_v51 = vpack.c.bf16 %v2085_v49, %v2081_v48 }
 0x7cc   : > { %2360 = vmatmul.bf16.vlgmr.msra.gmra.mxu2 %v2088_v50 }
 0x7cd   : > { %2374 = vmatmul.bf16.vlgmr.msrb.gmra.mxu3 %v2089_v51 }
 0x844   : > { %v2389_v32 = vpop.f32.mrf.mxu0 }
 0x845   : > { %v2403_v56 = vpop.f32.mrf.mxu1 }
 0x84c   : > { %v2391_v17 = vpop.f32.mrf.mxu0 }
 0x84d   : > { %v2405_v1 = vpop.f32.mrf.mxu1 }
 0x84f   : > { %v2361_v52 = vpop.f32.mrf.mxu2 }
 0x850   : > { %v2362_v53 = vadd.f32 %v3418_v30, %v2361_v52  ;;  %v2375_v54 = vpop.f32.mrf.mxu3 }
 0x852   : > { %v2376_v55 = vadd.f32 %v2375_v54, %v2362_v53 }
 0x854   : > { %v2390_v57 = vadd.f32 %v2389_v32, %v2376_v55 }
 0x856   : > { %v2404_v58 = vadd.f32 %v2403_v56, %v2390_v57 }
 0x857   : > { %v2363_v59 = vpop.f32.mrf.mxu2 }
 0x858   : > { %v2408_v60 = vadd.f32 %v2404_v58, %v4525_v18  ;;  %v2364_v13 = vadd.f32 %v3418_v30, %v2363_v59  ;;  %v2377_v62 = vpop.f32.mrf.mxu3 }
 0x85a   : > { %v2378_v63 = vadd.f32 %v2377_v62, %v2364_v13 }
 0x85c   : > { %v2392_v0 = vadd.f32 %v2391_v17, %v2378_v63  ;;  %2413 = sbr.rel (%p3154_p8) target bundleno = 2147 (0x863), region = 136 }
 0x85e   : > { %v2406_v4 = vadd.f32 %v2405_v1, %v2392_v0 }
 0x860   : > { %v2409_v5 = vadd.f32 %v2406_v4, %v4529_v31 }
 0x861   : > { %2414 = vst [vmem:[#allocation18] sm:$0xff] %v2408_v60 }
 0x862   : > { %2415 = vst [vmem:[#allocation18 + $0x8] sm:$0xff] %v2409_v5 }
 0x863 PF: > { %s4783_s26 = sld [smem:[#allocation26_spill]] }
 0x869   : > { %p3155_p9 = scmp.ne.s32.totalorder %s4783_s26, 1 }
 0x86b   : > { %2419 = sbr.rel (%p3155_p9) target bundleno = 2435 (0x983), region = 140 }
 0x870   : > { %2422 = vadd.xlane.f32.xlu0 %v2408_v60  ;;  %v3477_v34 = vld [vmem:[#allocation7] ss:$0 sm:$0xff]  ;;  %v3478_v38 = vld [vmem:[#allocation8] ss:$0 sm:$0xff] }
 0x878   : > { %2424 = vadd.xlane.f32.xlu0 %v2409_v5 }
 0x8e3   : > { %v2423_v18 = vpop.xlane.xlu0 %2422 }
 0x8e4   : > { %v2426_v6 = vmul.f32 %v2423_v18, %v4324_v10 }
 0x8e6   : > { %v2428_v7 = vsub.f32 %v2408_v60, %v2426_v6 }
 0x8e8   : > { %v2430_v8 = vmul.f32 %v2428_v7, %v2428_v7 }
 0x8ea   : > { %2432 = vadd.xlane.f32.xlu1 %v2430_v8 }
 0x8eb   : > { %v2425_v9 = vpop.xlane.xlu0 %2424 }
 0x8ec   : > { %v2427_v31 = vmul.f32 %v2425_v9, %v4324_v10 }
 0x8ee   : > { %v2429_v11 = vsub.f32 %v2409_v5, %v2427_v31 }
 0x8f0   : > { %v2431_v12 = vmul.f32 %v2429_v11, %v2429_v11 }
 0x8f2   : > { %2434 = vadd.xlane.f32.xlu1 %v2431_v12 }
 0x95d   : > { %v2433_v14 = vpop.xlane.xlu1 %2432 }
 0x95e   : > { %v2436_v15 = vmul.f32 %v2433_v14, %v4324_v10 }
 0x960   : > { %v2438_v16 = vadd.f32 1e-05, %v2436_v15 }
 0x962   : > { %3479 = vrsqrt.f32 %v2438_v16  ;;  %vm2446_vm3 = vweird.f32 %v2438_v16 }
 0x965   : > { %v2435_v21 = vpop.xlane.xlu1 %2434 }
 0x966   : > { %v2437_v22 = vmul.f32 %v2435_v21, %v4324_v10 }
 0x968   : > { %v3480_v61 = vpop.eup %3479  ;;  %v2439_v23 = vadd.f32 1e-05, %v2437_v22 }
 0x969   : > { %v2441_v24 = vmul.f32 %v3480_v61, %v2438_v16  ;;  %vm2447_vm2 = vweird.f32 %v3480_v61 }
 0x96a   : > { %3481 = vrsqrt.f32 %v2439_v23  ;;  %vm2448_vm4 = vmor %vm2446_vm3, %vm2447_vm2  ;;  %vm2456_vm6 = vweird.f32 %v2439_v23 }
 0x96b   : > { %v2442_v25 = vmul.f32 %v3480_v61, %v2441_v24 }
 0x96d   : > { %v2443_v26 = vmul.f32 0.5, %v2442_v25 }
 0x96f   : > { %v2444_v27 = vsub.f32 1.5, %v2443_v26 }
 0x970   : > { %v3482_v29 = vpop.eup %3481 }
 0x971   : > { %v2445_v28 = vmul.f32 %v3480_v61, %v2444_v27  ;;  %v2451_v33 = vmul.f32 %v3482_v29, %v2439_v23  ;;  %vm2457_vm5 = vweird.f32 %v3482_v29 }
 0x972   : > { %vm2458_vm7 = vmor %vm2456_vm6, %vm2457_vm5 }
 0x973   : > { %v2449_v35 = vsel %vm2448_vm4, %v3480_v61, %v2445_v28  ;;  %v2452_v3 = vmul.f32 %v3482_v29, %v2451_v33 }
 0x974   : > { %v2460_v37 = vmul.f32 %v2449_v35, %v2428_v7 }
 0x975   : > { %v2453_v39 = vmul.f32 0.5, %v2452_v3 }
 0x976   : > { %v2465_v10 = vmul.f32 %v3477_v34, %v2460_v37 }
 0x977   : > { %v2454_v42 = vsub.f32 1.5, %v2453_v39 }
 0x978   : > { %v2470_v2 = vadd.f32 %v3478_v38, %v2465_v10 }
 0x979   : > { %v2455_v43 = vmul.f32 %v3482_v29, %v2454_v42 }
 0x97a   : > { %2472 = vst [vmem:[#allocation18] sm:$0xff] %v2470_v2 }
 0x97b   : > { %v2459_v44 = vsel %vm2458_vm7, %v3482_v29, %v2455_v43 }
 0x97c   : > { %v2461_v45 = vmul.f32 %v2459_v44, %v2429_v11 }
 0x97e   : > { %v2466_v19 = vmul.f32 %v3477_v34, %v2461_v45 }
 0x980   : > { %v2471_v40 = vadd.f32 %v3478_v38, %v2466_v19 }
 0x982   : > { %2473 = vst [vmem:[#allocation18 + $0x8] sm:$0xff] %v2471_v40 }
 0x983 PF: > { %s4784_s1 = sld [smem:[#allocation26_spill]]  ;;  %s3939_s25 = smov [#allocation18]  }
 0x984   : > { %s2479_s16 = sshll.u32 %s3939_s25, 4  ;;  %s4785_s30 = sld [smem:[#allocation39_spill]]  ;;  %s2480_s16 = int_to_ptr.vmem [resolvable:$true] %s2479_s16 }
 0x985   : > { %s3940_s18 = smov 128   ;;  %s3941_s22 = smov 8  }
 0x989   : > { %p3345_p10 = scmp.eq.s32.totalorder %s4784_s1, 1 }
 0x98a   : > { %s2481_s12 = sshll.u32 %s4785_s30, 4  ;;  %s2482_s12 = int_to_ptr.hbm [resolvable:$true] %s2481_s12 }
 0x98b   : > { %3295 = dma.vmem_to_hbm [thread:$0]  (%p3345_p10), %s2480_s16, 256, %s2482_s12, [#allocation4], %s3940_s18, %s3940_s18, %s3941_s22  }
 0x98c   : > { %3904 = dma.done.wait (%p3345_p10), [#allocation4], 256  }
 0x98d   : > { %3906 = vsyncadd (%p3345_p10), [#allocation4], 4294967040 }
 0x98e PF: > { %s4786_s21 = sld [smem:[#allocation27_spill]] }
 0x98f   : > { %s4787_s18 = sld [smem:[#allocation24_spill]] }
 0x990   : > { %s4788_s19 = sld [smem:[#allocation25_spill]] }
 0x991   : > { %s4789_s20 = sld [smem:[#allocation28_spill]] }
 0x994   : > { %p26_p0 = scmp.ge.s32.totalorder %s4786_s21, 4  }
 0x996   :  { %28 = sbr.rel (!%p26_p0) target bundleno = 15 (0xf), region = 230 }
 0x99b   :  { %2498 = vsyncpa [#allocation3], 1 }
 0x99c   :  { %2500 = vsyncpa [#allocation3 + $0x1], 1 }
 0x99d   :  { %2501 = vsyncpa [#allocation6], 1 }
 0x99e   :  { %2502 = vsyncpa [#allocation9], 1 }
 0x99f   :  { %2503 = vsyncpa [#allocation4], 1 }
 0x9a0   :  { %2505 = vsyncpa [#allocation4 + $0x1], 1 }

</bundles_post_ra>
